<compile_context>
chip_gen: v7x
topology: tpu7x:2x2x1
jax: 0.10.0
libtpu: 0.0.40
codegen_flags: <defaults>
</compile_context>

<pallas_src>
import functools

import jax
import jax.numpy as jnp
from jax.experimental import pallas as pl
from jax.experimental.pallas import tpu as pltpu


def encoder_layer_kernel(x_ref,
                         wqkv_ref, bqkv_ref,
                         wo_ref, bo_ref,
                         w1_ref, b1_ref,
                         w2_ref, b2_ref,
                         out_ref,
                         *, nb, seq_len, nhead, negative_slope,
                         compute_dtype, head_pack):
    M, E = x_ref.shape                       # M = nb * seq_len
    Nb, L, H = nb, seq_len, nhead
    hd = E // H
    f32 = jnp.float32

    x = x_ref[...].astype(f32)               # (M, E) f32 residual copy
    xc = x.astype(compute_dtype)

    # --- fused QKV in-projection (scale folded into Wq/bq on host) ---
    qkv = jnp.dot(xc, wqkv_ref[...], preferred_element_type=f32) + bqkv_ref[...]

    q2d = qkv[:, :E].astype(compute_dtype)
    k2d = qkv[:, E:2 * E].astype(compute_dtype)
    v2d = qkv[:, 2 * E:].astype(compute_dtype)

    if head_pack == "einshape":
        # Layout-aware head split; K emitted already transposed to (hd, L) so
        # the score matmul contracts against the MXU-natural rhs layout.
        q = pltpu.einshape("(nl)(hd)->(hn)ld", q2d, n=Nb, l=L, h=H, d=hd)
        kT = pltpu.einshape("(nl)(hd)->(hn)dl", k2d, n=Nb, l=L, h=H, d=hd)
        v = pltpu.einshape("(nl)(hd)->(hn)ld", v2d, n=Nb, l=L, h=H, d=hd)
        s = jnp.einsum("bld,bdm->blm", q, kT, preferred_element_type=f32)
    else:
        # Portable fallback: hd-wide lane slices + axis-0 concat (known-good).
        def to_heads(t2d):
            t = t2d.reshape(Nb, L, E)
            return jnp.concatenate(
                [t[:, :, h * hd:(h + 1) * hd] for h in range(H)], axis=0)
        q, k, v = to_heads(q2d), to_heads(k2d), to_heads(v2d)
        s = jnp.einsum("bld,bmd->blm", q, k, preferred_element_type=f32)

    # --- per-(batch*head) softmax; denominator via EUP approximate reciprocal ---
    s = s - jnp.max(s, axis=-1, keepdims=True)
    p = jnp.exp(s)
    p = p * pl.reciprocal(jnp.sum(p, axis=-1, keepdims=True), approx=True)
    o = jnp.einsum("blm,bmd->bld", p.astype(compute_dtype), v,
                   preferred_element_type=f32)                  # (H*Nb, L, hd)

    # --- merge heads back to (M, E) in PyTorch head-concat order ---
    if head_pack == "einshape":
        o2d = pltpu.einshape("(hn)ld->(nl)(hd)", o, n=Nb, l=L, h=H, d=hd)
    else:
        o2d = jnp.concatenate([o[h * Nb:(h + 1) * Nb] for h in range(H)],
                              axis=-1).reshape(M, E)

    # --- output projection + residual ---
    attn = jnp.dot(o2d.astype(compute_dtype), wo_ref[...],
                   preferred_element_type=f32) + bo_ref[...]
    x1 = x + attn

    # --- feed-forward + residual; nn.LeakyReLU(True) => slope 1.0 => identity ---
    h1 = jnp.dot(x1.astype(compute_dtype), w1_ref[...],
                 preferred_element_type=f32) + b1_ref[...]
    if negative_slope != 1.0:                 # statically known; dead code skipped
        h1 = jnp.where(h1 >= 0, h1, negative_slope * h1)
    h2 = jnp.dot(h1.astype(compute_dtype), w2_ref[...],
                 preferred_element_type=f32) + b2_ref[...]

    y = (x1 + h2).astype(out_ref.dtype)
    out_ref[...] = y.reshape(out_ref.shape)   # lane-dense packed store if requested


def transformer_encoder_layer(src, params, *, nhead, num_chunks=None,
                              compute_dtype=jnp.bfloat16, core_parallel=False,
                              negative_slope=1.0):
    """src: (L, N, E) float32, matching PyTorch's (seq, batch, d_model) layout.

    num_chunks   : grid length; None => ~512 activation rows per chunk so the
                   BlockSpec pipeline can overlap DMA with compute.
    compute_dtype: matmul operand dtype (bf16 recommended; accumulation is f32).
    core_parallel: set True on v7x (and use an even num_chunks) to shard the
                   grid across both TensorCores.
    """
    L, N, E = src.shape
    F = params["w1"].shape[1]
    assert E % nhead == 0
    hd = E // nhead

    if num_chunks is None:
        num_chunks = min(N, max(1, (N * L) // 512))
        while N % num_chunks:
            num_chunks -= 1
    assert N % num_chunks == 0, "batch must divide evenly into grid chunks"
    Nb = N // num_chunks
    M = Nb * L

    # (L, N, E) -> (N, L, E) -> (N*L, E): batch folded into the matmul M dim.
    x2d = jnp.transpose(src, (1, 0, 2)).reshape(N * L, E)

    # Fuse in-projection weights/biases; fold 1/sqrt(hd) into Wq / bq.
    scale = 1.0 / (hd ** 0.5)
    w_qkv = jnp.concatenate([params["wq"] * scale, params["wk"], params["wv"]],
                            axis=1).astype(compute_dtype)
    b_qkv = jnp.concatenate([params["bq"] * scale, params["bk"], params["bv"]],
                            axis=1).astype(jnp.float32)
    wo = params["wo"].astype(compute_dtype)
    w1 = params["w1"].astype(compute_dtype)
    w2 = params["w2"].astype(compute_dtype)
    bo = params["bo"].astype(jnp.float32)
    b1 = params["b1"].astype(jnp.float32)
    b2 = params["b2"].astype(jnp.float32)

    dim_sem = (pltpu.CORE_PARALLEL,) if core_parallel else ("parallel",)

    # Cost estimate (advisory). Weights counted once: constant index maps.
    flops = int(2 * N * L * E * (3 * E + E + 2 * F) + 4 * N * L * L * E)
    transc = int(N * nhead * L * L + N * nhead * L)
    w_bytes = (jnp.dtype(compute_dtype).itemsize * (3 * E * E + E * E + 2 * E * F)
               + 4 * (5 * E + F))
    bytes_acc = int(8 * N * L * E + w_bytes)

    # VMEM budget: weights (<=2 buffers) + in/out activation blocks (double
    # buffered) + f32 intermediates.  Capped at 60 MiB so it is safe on v7x's
    # 64 MiB physical VMEM; on v6e this can be raised toward ~100 MiB.
    act_bytes = 4 * M * E * 2
    interm_bytes = 4 * M * (3 * E + 3 * E + E + F + E)
    vmem_limit_bytes = int(min(60 << 20,
                               max(32 << 20,
                                   2 * (w_bytes + act_bytes) + interm_bytes)))

    # Lane-dense packed output only helps when E < 128 lanes; requires L*E to be
    # a lane multiple and a legal sublane block.
    pack_output_ok = (E % 128 != 0) and ((L * E) % 128 == 0) and \
                     (Nb % 8 == 0 or Nb == N)

    def _run(head_pack, single_buffer_weights, pack_output):
        kernel = functools.partial(
            encoder_layer_kernel, nb=Nb, seq_len=L, nhead=nhead,
            negative_slope=negative_slope, compute_dtype=compute_dtype,
            head_pack=head_pack)

        def wspec(shape):
            if single_buffer_weights:
                # Constant index map => a second buffer is pure VMEM waste.
                return pl.BlockSpec(shape, lambda g: (0, 0),
                                    pipeline_mode=pl.Buffered(1))
            return pl.BlockSpec(shape, lambda g: (0, 0))

        if pack_output:
            out_shape = jax.ShapeDtypeStruct((N, L * E), src.dtype)
            out_spec = pl.BlockSpec((Nb, L * E), lambda g: (g, 0))
        else:
            out_shape = jax.ShapeDtypeStruct((N * L, E), src.dtype)
            out_spec = pl.BlockSpec((M, E), lambda g: (g, 0))

        out = pl.pallas_call(
            kernel,
            out_shape=out_shape,
            grid=(num_chunks,),
            in_specs=[
                pl.BlockSpec((M, E), lambda g: (g, 0)),     # activations chunk
                wspec((E, 3 * E)), wspec((1, 3 * E)),       # fused Wqkv, bqkv
                wspec((E, E)), wspec((1, E)),               # Wo, bo
                wspec((E, F)), wspec((1, F)),               # W1, b1
                wspec((F, E)), wspec((1, E)),               # W2, b2
            ],
            out_specs=out_spec,
            compiler_params=pltpu.CompilerParams(
                dimension_semantics=dim_sem,
                vmem_limit_bytes=vmem_limit_bytes),
            cost_estimate=pl.CostEstimate(flops=flops,
                                          transcendentals=transc,
                                          bytes_accessed=bytes_acc),
        )(x2d, w_qkv, b_qkv, wo, bo, w1, b1, w2, b2)
        return jax.block_until_ready(out)

    # Feature-degradation ladder: try the fully optimized configuration first,
    # drop optional lowering features one at a time, and end at the
    # previously-validated concat / double-buffered / unpacked baseline.
    pack_opts = (True, False) if pack_output_ok else (False,)
    attempts = [dict(head_pack=h, single_buffer_weights=b, pack_output=p)
                for h in ("einshape", "concat")
                for b in (True, False)
                for p in pack_opts]
    last_err = None
    out = None
    for cfg in attempts:
        try:
            out = _run(**cfg)
            break
        except Exception as e:      # noqa: BLE001 - fall back across jax builds
            last_err = e
    if out is None:
        raise last_err

    # Both the packed (N, L*E) and unpacked (N*L, E) layouts reshape identically.
    return jnp.transpose(out.reshape(N, L, E), (1, 0, 2))     # back to (L, N, E)


def reference_forward(src, params, *, nhead):
    """Pure-JAX f32 reference matching PyTorch semantics."""
    L, N, E = src.shape
    hd = E // nhead
    scale = 1.0 / (hd ** 0.5)
    x = jnp.transpose(src, (1, 0, 2))                          # (N, L, E)

    q = x @ params["wq"] + params["bq"]
    k = x @ params["wk"] + params["bk"]
    v = x @ params["wv"] + params["bv"]

    def split(t):  # (N, L, E) -> (N, H, L, hd)
        return jnp.transpose(t.reshape(N, L, nhead, hd), (0, 2, 1, 3))

    qh, kh, vh = split(q), split(k), split(v)
    s = jnp.einsum("nhld,nhmd->nhlm", qh, kh) * scale
    p = jax.nn.softmax(s, axis=-1)
    o = jnp.einsum("nhlm,nhmd->nhld", p, vh)
    o = jnp.transpose(o, (0, 2, 1, 3)).reshape(N, L, E)
    attn_out = o @ params["wo"] + params["bo"]

    x1 = x + attn_out
    h1 = x1 @ params["w1"] + params["b1"]
    h1 = jnp.where(h1 >= 0, h1, 1.0 * h1)                      # LeakyReLU(slope=1.0)
    h2 = h1 @ params["w2"] + params["b2"]
    out = x1 + h2
    return jnp.transpose(out, (1, 0, 2))


def init_params(key, d_model, dim_feedforward):
    E, F = d_model, dim_feedforward
    ks = jax.random.split(key, 8)
    scl = 0.1
    # Weights stored pre-transposed (in_features, out_features): kernel does x @ W.
    return dict(
        wq=scl * jax.random.normal(ks[0], (E, E), jnp.float32),
        wk=scl * jax.random.normal(ks[1], (E, E), jnp.float32),
        wv=scl * jax.random.normal(ks[2], (E, E), jnp.float32),
        bq=scl * jax.random.normal(ks[3], (1, E), jnp.float32),
        bk=jnp.zeros((1, E), jnp.float32),
        bv=jnp.zeros((1, E), jnp.float32),
        wo=scl * jax.random.normal(ks[4], (E, E), jnp.float32),
        bo=jnp.zeros((1, E), jnp.float32),
        w1=scl * jax.random.normal(ks[5], (E, F), jnp.float32),
        b1=scl * jax.random.normal(ks[6], (1, F), jnp.float32),
        w2=scl * jax.random.normal(ks[7], (F, E), jnp.float32),
        b2=jnp.zeros((1, E), jnp.float32),
    )


if __name__ == "__main__":
    L, N, E = 8, 2, 32          # seq, batch, d_model
    NHEAD = 4
    DFF = 16

    key = jax.random.PRNGKey(0)
    k_src, k_par = jax.random.split(key)
    src = jax.random.normal(k_src, (L, N, E), jnp.float32)
    params = init_params(k_par, E, DFF)

    ref = reference_forward(src, params, nhead=NHEAD)

    # f32 compute, 2-step pipelined grid: near-exact parity (approx reciprocal
    # in the softmax is the only deviation).
    out_f32 = jax.block_until_ready(
        transformer_encoder_layer(src, params, nhead=NHEAD, num_chunks=2,
                                  compute_dtype=jnp.float32))
    assert out_f32.shape == (L, N, E)
    assert jnp.allclose(out_f32, ref, atol=2e-3, rtol=2e-3), "f32 mismatch"

    # bf16 MXU compute (production config), 2-step grid.
    out_bf16 = jax.block_until_ready(
        transformer_encoder_layer(src, params, nhead=NHEAD, num_chunks=2))
    assert jnp.allclose(out_bf16, ref, atol=5e-2, rtol=5e-2), "bf16 mismatch"

    # Single-chunk config exercising the lane-dense packed-output path (E < 128).
    out_packed = jax.block_until_ready(
        transformer_encoder_layer(src, params, nhead=NHEAD, num_chunks=1))
    assert jnp.allclose(out_packed, ref, atol=5e-2, rtol=5e-2), "packed mismatch"

    print("KERNEL_OK")
</pallas_src>

<mosaic_0001>
module attributes {stable_mosaic.version = 11 : i64} {
  func.func @encoder_layer_kernel(%arg0: i32, %arg1: memref<8x32xf32, #tpu.memory_space<vmem>>, %arg2: memref<32x96xf32, #tpu.memory_space<vmem>>, %arg3: memref<1x96xf32, #tpu.memory_space<vmem>>, %arg4: memref<32x32xf32, #tpu.memory_space<vmem>>, %arg5: memref<1x32xf32, #tpu.memory_space<vmem>>, %arg6: memref<32x16xf32, #tpu.memory_space<vmem>>, %arg7: memref<1x16xf32, #tpu.memory_space<vmem>>, %arg8: memref<16x32xf32, #tpu.memory_space<vmem>>, %arg9: memref<1x32xf32, #tpu.memory_space<vmem>>, %arg10: memref<8x32xf32, #tpu.memory_space<vmem>>) attributes {dimension_semantics = [#tpu.dimension_semantics<parallel>], iteration_bounds = array<i64: 2>, scalar_prefetch = 0 : i64, scratch_operands = 0 : i64, tpu.core_type = #tpu.core_type<tc>, window_params = [{transform_indices = @transform_0, window_bounds = array<i64: 8, 32>}, {pipeline_mode = #tpu.pipeline_mode<synchronous>, transform_indices = @transform_1, window_bounds = array<i64: 32, 96>}, {pipeline_mode = #tpu.pipeline_mode<synchronous>, transform_indices = @transform_2, window_bounds = array<i64: 1, 96>}, {pipeline_mode = #tpu.pipeline_mode<synchronous>, transform_indices = @transform_3, window_bounds = array<i64: 32, 32>}, {pipeline_mode = #tpu.pipeline_mode<synchronous>, transform_indices = @transform_4, window_bounds = array<i64: 1, 32>}, {pipeline_mode = #tpu.pipeline_mode<synchronous>, transform_indices = @transform_5, window_bounds = array<i64: 32, 16>}, {pipeline_mode = #tpu.pipeline_mode<synchronous>, transform_indices = @transform_6, window_bounds = array<i64: 1, 16>}, {pipeline_mode = #tpu.pipeline_mode<synchronous>, transform_indices = @transform_7, window_bounds = array<i64: 16, 32>}, {pipeline_mode = #tpu.pipeline_mode<synchronous>, transform_indices = @transform_8, window_bounds = array<i64: 1, 32>}, {transform_indices = @transform_9, window_bounds = array<i64: 8, 32>}]} {
    %c0 = arith.constant 0 : index
    %c0_0 = arith.constant 0 : index
    %0 = vector.load %arg1[%c0, %c0_0] : memref<8x32xf32, #tpu.memory_space<vmem>>, vector<8x32xf32>
    %c0_1 = arith.constant 0 : index
    %c0_2 = arith.constant 0 : index
    %1 = vector.load %arg2[%c0_1, %c0_2] : memref<32x96xf32, #tpu.memory_space<vmem>>, vector<32x96xf32>
    %cst = arith.constant dense<0.000000e+00> : vector<8x96xf32>
    %2 = tpu.matmul %0, %1, %cst {dimension_numbers = #tpu.dot_dimension_numbers<[1], [0], [0], [1], [0, 0, 1, 1], [], []>} : vector<8x32xf32>, vector<32x96xf32>, vector<8x96xf32> -> vector<8x96xf32>
    %c0_3 = arith.constant 0 : index
    %c0_4 = arith.constant 0 : index
    %3 = vector.load %arg3[%c0_3, %c0_4] : memref<1x96xf32, #tpu.memory_space<vmem>>, vector<1x96xf32>
    %4 = vector.broadcast %3 : vector<1x96xf32> to vector<8x96xf32>
    %5 = arith.addf %2, %4 : vector<8x96xf32>
    %6 = vector.extract_strided_slice %5 {offsets = [0, 0], sizes = [8, 32], strides = [1, 1]} : vector<8x96xf32> to vector<8x32xf32>
    %7 = vector.extract_strided_slice %5 {offsets = [0, 32], sizes = [8, 32], strides = [1, 1]} : vector<8x96xf32> to vector<8x32xf32>
    %8 = vector.extract_strided_slice %5 {offsets = [0, 64], sizes = [8, 32], strides = [1, 1]} : vector<8x96xf32> to vector<8x32xf32>
    %9 = vector.shape_cast %6 : vector<8x32xf32> to vector<1x8x32xf32>
    %10 = vector.extract_strided_slice %9 {offsets = [0, 0, 0], sizes = [1, 8, 8], strides = [1, 1, 1]} : vector<1x8x32xf32> to vector<1x8x8xf32>
    %11 = vector.extract_strided_slice %9 {offsets = [0, 0, 8], sizes = [1, 8, 8], strides = [1, 1, 1]} : vector<1x8x32xf32> to vector<1x8x8xf32>
    %12 = vector.extract_strided_slice %9 {offsets = [0, 0, 16], sizes = [1, 8, 8], strides = [1, 1, 1]} : vector<1x8x32xf32> to vector<1x8x8xf32>
    %13 = vector.extract_strided_slice %9 {offsets = [0, 0, 24], sizes = [1, 8, 8], strides = [1, 1, 1]} : vector<1x8x32xf32> to vector<1x8x8xf32>
    %14 = tpu.concatenate %10, %11, %12, %13 in 0 : vector<1x8x8xf32>, vector<1x8x8xf32>, vector<1x8x8xf32>, vector<1x8x8xf32> -> vector<4x8x8xf32>
    %15 = vector.shape_cast %7 : vector<8x32xf32> to vector<1x8x32xf32>
    %16 = vector.extract_strided_slice %15 {offsets = [0, 0, 0], sizes = [1, 8, 8], strides = [1, 1, 1]} : vector<1x8x32xf32> to vector<1x8x8xf32>
    %17 = vector.extract_strided_slice %15 {offsets = [0, 0, 8], sizes = [1, 8, 8], strides = [1, 1, 1]} : vector<1x8x32xf32> to vector<1x8x8xf32>
    %18 = vector.extract_strided_slice %15 {offsets = [0, 0, 16], sizes = [1, 8, 8], strides = [1, 1, 1]} : vector<1x8x32xf32> to vector<1x8x8xf32>
    %19 = vector.extract_strided_slice %15 {offsets = [0, 0, 24], sizes = [1, 8, 8], strides = [1, 1, 1]} : vector<1x8x32xf32> to vector<1x8x8xf32>
    %20 = tpu.concatenate %16, %17, %18, %19 in 0 : vector<1x8x8xf32>, vector<1x8x8xf32>, vector<1x8x8xf32>, vector<1x8x8xf32> -> vector<4x8x8xf32>
    %21 = vector.shape_cast %8 : vector<8x32xf32> to vector<1x8x32xf32>
    %22 = vector.extract_strided_slice %21 {offsets = [0, 0, 0], sizes = [1, 8, 8], strides = [1, 1, 1]} : vector<1x8x32xf32> to vector<1x8x8xf32>
    %23 = vector.extract_strided_slice %21 {offsets = [0, 0, 8], sizes = [1, 8, 8], strides = [1, 1, 1]} : vector<1x8x32xf32> to vector<1x8x8xf32>
    %24 = vector.extract_strided_slice %21 {offsets = [0, 0, 16], sizes = [1, 8, 8], strides = [1, 1, 1]} : vector<1x8x32xf32> to vector<1x8x8xf32>
    %25 = vector.extract_strided_slice %21 {offsets = [0, 0, 24], sizes = [1, 8, 8], strides = [1, 1, 1]} : vector<1x8x32xf32> to vector<1x8x8xf32>
    %26 = tpu.concatenate %22, %23, %24, %25 in 0 : vector<1x8x8xf32>, vector<1x8x8xf32>, vector<1x8x8xf32>, vector<1x8x8xf32> -> vector<4x8x8xf32>
    "tpu.trace_start"() <{level = 10 : i32, message = "bld,bmd->blm"}> : () -> ()
    %cst_5 = arith.constant dense<0.000000e+00> : vector<4x8x8xf32>
    %27 = tpu.matmul %14, %20, %cst_5 {dimension_numbers = #tpu.dot_dimension_numbers<[2], [2], [1], [1], [0, 0, 0, 1, 1, 1], [0], [0]>} : vector<4x8x8xf32>, vector<4x8x8xf32>, vector<4x8x8xf32> -> vector<4x8x8xf32>
    "tpu.trace_stop"() : () -> ()
    %cst_6 = arith.constant dense<0xFF800000> : vector<4x8xf32>
    %28 = vector.multi_reduction <maximumf>, %27, %cst_6 [2] : vector<4x8x8xf32> to vector<4x8xf32>
    %29 = vector.shape_cast %28 : vector<4x8xf32> to vector<4x8x1xf32>
    %30 = vector.broadcast %29 : vector<4x8x1xf32> to vector<4x8x8xf32>
    %31 = arith.subf %27, %30 : vector<4x8x8xf32>
    %32 = math.exp %31 : vector<4x8x8xf32>
    %cst_7 = arith.constant dense<0.000000e+00> : vector<4x8xf32>
    %33 = vector.multi_reduction <add>, %32, %cst_7 [2] : vector<4x8x8xf32> to vector<4x8xf32>
    %34 = vector.shape_cast %33 : vector<4x8xf32> to vector<4x8x1xf32>
    %35 = tpu.reciprocal %34 {approx = true} : vector<4x8x1xf32> -> vector<4x8x1xf32>
    %36 = vector.broadcast %35 : vector<4x8x1xf32> to vector<4x8x8xf32>
    %37 = arith.mulf %32, %36 : vector<4x8x8xf32>
    "tpu.trace_start"() <{level = 10 : i32, message = "blm,bmd->bld"}> : () -> ()
    %cst_8 = arith.constant dense<0.000000e+00> : vector<4x8x8xf32>
    %38 = tpu.matmul %37, %26, %cst_8 {dimension_numbers = #tpu.dot_dimension_numbers<[2], [1], [1], [2], [0, 0, 0, 1, 1, 2], [0], [0]>} : vector<4x8x8xf32>, vector<4x8x8xf32>, vector<4x8x8xf32> -> vector<4x8x8xf32>
    "tpu.trace_stop"() : () -> ()
    %39 = vector.extract_strided_slice %38 {offsets = [0, 0, 0], sizes = [1, 8, 8], strides = [1, 1, 1]} : vector<4x8x8xf32> to vector<1x8x8xf32>
    %40 = vector.extract_strided_slice %38 {offsets = [1, 0, 0], sizes = [1, 8, 8], strides = [1, 1, 1]} : vector<4x8x8xf32> to vector<1x8x8xf32>
    %41 = vector.extract_strided_slice %38 {offsets = [2, 0, 0], sizes = [1, 8, 8], strides = [1, 1, 1]} : vector<4x8x8xf32> to vector<1x8x8xf32>
    %42 = vector.extract_strided_slice %38 {offsets = [3, 0, 0], sizes = [1, 8, 8], strides = [1, 1, 1]} : vector<4x8x8xf32> to vector<1x8x8xf32>
    %43 = tpu.concatenate %39, %40, %41, %42 in 2 : vector<1x8x8xf32>, vector<1x8x8xf32>, vector<1x8x8xf32>, vector<1x8x8xf32> -> vector<1x8x32xf32>
    %44 = vector.shape_cast %43 : vector<1x8x32xf32> to vector<8x32xf32>
    %c0_9 = arith.constant 0 : index
    %c0_10 = arith.constant 0 : index
    %45 = vector.load %arg4[%c0_9, %c0_10] : memref<32x32xf32, #tpu.memory_space<vmem>>, vector<32x32xf32>
    %cst_11 = arith.constant dense<0.000000e+00> : vector<8x32xf32>
    %46 = tpu.matmul %44, %45, %cst_11 {dimension_numbers = #tpu.dot_dimension_numbers<[1], [0], [0], [1], [0, 0, 1, 1], [], []>} : vector<8x32xf32>, vector<32x32xf32>, vector<8x32xf32> -> vector<8x32xf32>
    %c0_12 = arith.constant 0 : index
    %c0_13 = arith.constant 0 : index
    %47 = vector.load %arg5[%c0_12, %c0_13] : memref<1x32xf32, #tpu.memory_space<vmem>>, vector<1x32xf32>
    %48 = vector.broadcast %47 : vector<1x32xf32> to vector<8x32xf32>
    %49 = arith.addf %46, %48 : vector<8x32xf32>
    %50 = arith.addf %0, %49 : vector<8x32xf32>
    %c0_14 = arith.constant 0 : index
    %c0_15 = arith.constant 0 : index
    %51 = vector.load %arg6[%c0_14, %c0_15] : memref<32x16xf32, #tpu.memory_space<vmem>>, vector<32x16xf32>
    %cst_16 = arith.constant dense<0.000000e+00> : vector<8x16xf32>
    %52 = tpu.matmul %50, %51, %cst_16 {dimension_numbers = #tpu.dot_dimension_numbers<[1], [0], [0], [1], [0, 0, 1, 1], [], []>} : vector<8x32xf32>, vector<32x16xf32>, vector<8x16xf32> -> vector<8x16xf32>
    %c0_17 = arith.constant 0 : index
    %c0_18 = arith.constant 0 : index
    %53 = vector.load %arg7[%c0_17, %c0_18] : memref<1x16xf32, #tpu.memory_space<vmem>>, vector<1x16xf32>
    %54 = vector.broadcast %53 : vector<1x16xf32> to vector<8x16xf32>
    %55 = arith.addf %52, %54 : vector<8x16xf32>
    %c0_19 = arith.constant 0 : index
    %c0_20 = arith.constant 0 : index
    %56 = vector.load %arg8[%c0_19, %c0_20] : memref<16x32xf32, #tpu.memory_space<vmem>>, vector<16x32xf32>
    %cst_21 = arith.constant dense<0.000000e+00> : vector<8x32xf32>
    %57 = tpu.matmul %55, %56, %cst_21 {dimension_numbers = #tpu.dot_dimension_numbers<[1], [0], [0], [1], [0, 0, 1, 1], [], []>} : vector<8x16xf32>, vector<16x32xf32>, vector<8x32xf32> -> vector<8x32xf32>
    %c0_22 = arith.constant 0 : index
    %c0_23 = arith.constant 0 : index
    %58 = vector.load %arg9[%c0_22, %c0_23] : memref<1x32xf32, #tpu.memory_space<vmem>>, vector<1x32xf32>
    %59 = vector.broadcast %58 : vector<1x32xf32> to vector<8x32xf32>
    %60 = arith.addf %57, %59 : vector<8x32xf32>
    %61 = arith.addf %50, %60 : vector<8x32xf32>
    %c0_24 = arith.constant 0 : index
    %c0_25 = arith.constant 0 : index
    %62 = vector.load %arg10[%c0_24, %c0_25] : memref<8x32xf32, #tpu.memory_space<vmem>>, vector<8x32xf32>
    tpu.vector_store %arg10[%c0_24, %c0_25], %61 {strides = array<i32>} : memref<8x32xf32, #tpu.memory_space<vmem>>, vector<8x32xf32>,
    return
  }
  func.func @transform_0(%arg0: i32) -> (i32, i32) {
    %c0_i32 = arith.constant 0 : i32
    %c0_i32_0 = arith.constant 0 : i32
    return %arg0, %c0_i32 : i32, i32
  }
  func.func @transform_1(%arg0: i32) -> (i32, i32) {
    %c0_i32 = arith.constant 0 : i32
    %c0_i32_0 = arith.constant 0 : i32
    %c0_i32_1 = arith.constant 0 : i32
    return %c0_i32, %c0_i32_0 : i32, i32
  }
  func.func @transform_2(%arg0: i32) -> (i32, i32) {
    %c0_i32 = arith.constant 0 : i32
    %c0_i32_0 = arith.constant 0 : i32
    %c0_i32_1 = arith.constant 0 : i32
    return %c0_i32, %c0_i32_0 : i32, i32
  }
  func.func @transform_3(%arg0: i32) -> (i32, i32) {
    %c0_i32 = arith.constant 0 : i32
    %c0_i32_0 = arith.constant 0 : i32
    %c0_i32_1 = arith.constant 0 : i32
    return %c0_i32, %c0_i32_0 : i32, i32
  }
  func.func @transform_4(%arg0: i32) -> (i32, i32) {
    %c0_i32 = arith.constant 0 : i32
    %c0_i32_0 = arith.constant 0 : i32
    %c0_i32_1 = arith.constant 0 : i32
    return %c0_i32, %c0_i32_0 : i32, i32
  }
  func.func @transform_5(%arg0: i32) -> (i32, i32) {
    %c0_i32 = arith.constant 0 : i32
    %c0_i32_0 = arith.constant 0 : i32
    %c0_i32_1 = arith.constant 0 : i32
    return %c0_i32, %c0_i32_0 : i32, i32
  }
  func.func @transform_6(%arg0: i32) -> (i32, i32) {
    %c0_i32 = arith.constant 0 : i32
    %c0_i32_0 = arith.constant 0 : i32
    %c0_i32_1 = arith.constant 0 : i32
    return %c0_i32, %c0_i32_0 : i32, i32
  }
  func.func @transform_7(%arg0: i32) -> (i32, i32) {
    %c0_i32 = arith.constant 0 : i32
    %c0_i32_0 = arith.constant 0 : i32
    %c0_i32_1 = arith.constant 0 : i32
    return %c0_i32, %c0_i32_0 : i32, i32
  }
  func.func @transform_8(%arg0: i32) -> (i32, i32) {
    %c0_i32 = arith.constant 0 : i32
    %c0_i32_0 = arith.constant 0 : i32
    %c0_i32_1 = arith.constant 0 : i32
    return %c0_i32, %c0_i32_0 : i32, i32
  }
  func.func @transform_9(%arg0: i32) -> (i32, i32) {
    %c0_i32 = arith.constant 0 : i32
    %c0_i32_0 = arith.constant 0 : i32
    return %arg0, %c0_i32 : i32, i32
  }
}

module attributes {stable_mosaic.version = 11 : i64} {
  func.func @encoder_layer_kernel(%arg0: i32, %arg1: memref<8x32xf32, #tpu.memory_space<vmem>>, %arg2: memref<32x96xf32, #tpu.memory_space<vmem>>, %arg3: memref<1x96xf32, #tpu.memory_space<vmem>>, %arg4: memref<32x32xf32, #tpu.memory_space<vmem>>, %arg5: memref<1x32xf32, #tpu.memory_space<vmem>>, %arg6: memref<32x16xf32, #tpu.memory_space<vmem>>, %arg7: memref<1x16xf32, #tpu.memory_space<vmem>>, %arg8: memref<16x32xf32, #tpu.memory_space<vmem>>, %arg9: memref<1x32xf32, #tpu.memory_space<vmem>>, %arg10: memref<8x32xf32, #tpu.memory_space<vmem>>) attributes {dimension_semantics = [#tpu.dimension_semantics<parallel>], iteration_bounds = array<i64: 2>, scalar_prefetch = 0 : i64, scratch_operands = 0 : i64, tpu.core_type = #tpu.core_type<tc>, window_params = [{transform_indices = @transform_0, window_bounds = array<i64: 8, 32>}, {pipeline_mode = #tpu.pipeline_mode<synchronous>, transform_indices = @transform_1, window_bounds = array<i64: 32, 96>}, {pipeline_mode = #tpu.pipeline_mode<synchronous>, transform_indices = @transform_2, window_bounds = array<i64: 1, 96>}, {pipeline_mode = #tpu.pipeline_mode<synchronous>, transform_indices = @transform_3, window_bounds = array<i64: 32, 32>}, {pipeline_mode = #tpu.pipeline_mode<synchronous>, transform_indices = @transform_4, window_bounds = array<i64: 1, 32>}, {pipeline_mode = #tpu.pipeline_mode<synchronous>, transform_indices = @transform_5, window_bounds = array<i64: 32, 16>}, {pipeline_mode = #tpu.pipeline_mode<synchronous>, transform_indices = @transform_6, window_bounds = array<i64: 1, 16>}, {pipeline_mode = #tpu.pipeline_mode<synchronous>, transform_indices = @transform_7, window_bounds = array<i64: 16, 32>}, {pipeline_mode = #tpu.pipeline_mode<synchronous>, transform_indices = @transform_8, window_bounds = array<i64: 1, 32>}, {transform_indices = @transform_9, window_bounds = array<i64: 8, 32>}]} {
    %c0 = arith.constant 0 : index
    %c0_0 = arith.constant 0 : index
    %0 = vector.load %arg1[%c0, %c0_0] : memref<8x32xf32, #tpu.memory_space<vmem>>, vector<8x32xf32>
    %c0_1 = arith.constant 0 : index
    %c0_2 = arith.constant 0 : index
    %1 = vector.load %arg2[%c0_1, %c0_2] : memref<32x96xf32, #tpu.memory_space<vmem>>, vector<32x96xf32>
    %cst = arith.constant dense<0.000000e+00> : vector<8x96xf32>
    %2 = tpu.matmul %0, %1, %cst {dimension_numbers = #tpu.dot_dimension_numbers<[1], [0], [0], [1], [0, 0, 1, 1], [], []>} : vector<8x32xf32>, vector<32x96xf32>, vector<8x96xf32> -> vector<8x96xf32>
    %c0_3 = arith.constant 0 : index
    %c0_4 = arith.constant 0 : index
    %3 = vector.load %arg3[%c0_3, %c0_4] : memref<1x96xf32, #tpu.memory_space<vmem>>, vector<1x96xf32>
    %4 = vector.broadcast %3 : vector<1x96xf32> to vector<8x96xf32>
    %5 = arith.addf %2, %4 : vector<8x96xf32>
    %6 = vector.extract_strided_slice %5 {offsets = [0, 0], sizes = [8, 32], strides = [1, 1]} : vector<8x96xf32> to vector<8x32xf32>
    %7 = vector.extract_strided_slice %5 {offsets = [0, 32], sizes = [8, 32], strides = [1, 1]} : vector<8x96xf32> to vector<8x32xf32>
    %8 = vector.extract_strided_slice %5 {offsets = [0, 64], sizes = [8, 32], strides = [1, 1]} : vector<8x96xf32> to vector<8x32xf32>
    %9 = vector.shape_cast %6 : vector<8x32xf32> to vector<1x8x32xf32>
    %10 = vector.extract_strided_slice %9 {offsets = [0, 0, 0], sizes = [1, 8, 8], strides = [1, 1, 1]} : vector<1x8x32xf32> to vector<1x8x8xf32>
    %11 = vector.extract_strided_slice %9 {offsets = [0, 0, 8], sizes = [1, 8, 8], strides = [1, 1, 1]} : vector<1x8x32xf32> to vector<1x8x8xf32>
    %12 = vector.extract_strided_slice %9 {offsets = [0, 0, 16], sizes = [1, 8, 8], strides = [1, 1, 1]} : vector<1x8x32xf32> to vector<1x8x8xf32>
    %13 = vector.extract_strided_slice %9 {offsets = [0, 0, 24], sizes = [1, 8, 8], strides = [1, 1, 1]} : vector<1x8x32xf32> to vector<1x8x8xf32>
    %14 = tpu.concatenate %10, %11, %12, %13 in 0 : vector<1x8x8xf32>, vector<1x8x8xf32>, vector<1x8x8xf32>, vector<1x8x8xf32> -> vector<4x8x8xf32>
    %15 = vector.shape_cast %7 : vector<8x32xf32> to vector<1x8x32xf32>
    %16 = vector.extract_strided_slice %15 {offsets = [0, 0, 0], sizes = [1, 8, 8], strides = [1, 1, 1]} : vector<1x8x32xf32> to vector<1x8x8xf32>
    %17 = vector.extract_strided_slice %15 {offsets = [0, 0, 8], sizes = [1, 8, 8], strides = [1, 1, 1]} : vector<1x8x32xf32> to vector<1x8x8xf32>
    %18 = vector.extract_strided_slice %15 {offsets = [0, 0, 16], sizes = [1, 8, 8], strides = [1, 1, 1]} : vector<1x8x32xf32> to vector<1x8x8xf32>
    %19 = vector.extract_strided_slice %15 {offsets = [0, 0, 24], sizes = [1, 8, 8], strides = [1, 1, 1]} : vector<1x8x32xf32> to vector<1x8x8xf32>
    %20 = tpu.concatenate %16, %17, %18, %19 in 0 : vector<1x8x8xf32>, vector<1x8x8xf32>, vector<1x8x8xf32>, vector<1x8x8xf32> -> vector<4x8x8xf32>
    %21 = vector.shape_cast %8 : vector<8x32xf32> to vector<1x8x32xf32>
    %22 = vector.extract_strided_slice %21 {offsets = [0, 0, 0], sizes = [1, 8, 8], strides = [1, 1, 1]} : vector<1x8x32xf32> to vector<1x8x8xf32>
    %23 = vector.extract_strided_slice %21 {offsets = [0, 0, 8], sizes = [1, 8, 8], strides = [1, 1, 1]} : vector<1x8x32xf32> to vector<1x8x8xf32>
    %24 = vector.extract_strided_slice %21 {offsets = [0, 0, 16], sizes = [1, 8, 8], strides = [1, 1, 1]} : vector<1x8x32xf32> to vector<1x8x8xf32>
    %25 = vector.extract_strided_slice %21 {offsets = [0, 0, 24], sizes = [1, 8, 8], strides = [1, 1, 1]} : vector<1x8x32xf32> to vector<1x8x8xf32>
    %26 = tpu.concatenate %22, %23, %24, %25 in 0 : vector<1x8x8xf32>, vector<1x8x8xf32>, vector<1x8x8xf32>, vector<1x8x8xf32> -> vector<4x8x8xf32>
    "tpu.trace_start"() <{level = 10 : i32, message = "bld,bmd->blm"}> : () -> ()
    %cst_5 = arith.constant dense<0.000000e+00> : vector<4x8x8xf32>
    %27 = tpu.matmul %14, %20, %cst_5 {dimension_numbers = #tpu.dot_dimension_numbers<[2], [2], [1], [1], [0, 0, 0, 1, 1, 1], [0], [0]>} : vector<4x8x8xf32>, vector<4x8x8xf32>, vector<4x8x8xf32> -> vector<4x8x8xf32>
    "tpu.trace_stop"() : () -> ()
    %cst_6 = arith.constant dense<0xFF800000> : vector<4x8xf32>
    %28 = vector.multi_reduction <maximumf>, %27, %cst_6 [2] : vector<4x8x8xf32> to vector<4x8xf32>
    %29 = vector.shape_cast %28 : vector<4x8xf32> to vector<4x8x1xf32>
    %30 = vector.broadcast %29 : vector<4x8x1xf32> to vector<4x8x8xf32>
    %31 = arith.subf %27, %30 : vector<4x8x8xf32>
    %32 = math.exp %31 : vector<4x8x8xf32>
    %cst_7 = arith.constant dense<0.000000e+00> : vector<4x8xf32>
    %33 = vector.multi_reduction <add>, %32, %cst_7 [2] : vector<4x8x8xf32> to vector<4x8xf32>
    %34 = vector.shape_cast %33 : vector<4x8xf32> to vector<4x8x1xf32>
    %35 = tpu.reciprocal %34 {approx = true} : vector<4x8x1xf32> -> vector<4x8x1xf32>
    %36 = vector.broadcast %35 : vector<4x8x1xf32> to vector<4x8x8xf32>
    %37 = arith.mulf %32, %36 : vector<4x8x8xf32>
    "tpu.trace_start"() <{level = 10 : i32, message = "blm,bmd->bld"}> : () -> ()
    %cst_8 = arith.constant dense<0.000000e+00> : vector<4x8x8xf32>
    %38 = tpu.matmul %37, %26, %cst_8 {dimension_numbers = #tpu.dot_dimension_numbers<[2], [1], [1], [2], [0, 0, 0, 1, 1, 2], [0], [0]>} : vector<4x8x8xf32>, vector<4x8x8xf32>, vector<4x8x8xf32> -> vector<4x8x8xf32>
    "tpu.trace_stop"() : () -> ()
    %39 = vector.extract_strided_slice %38 {offsets = [0, 0, 0], sizes = [1, 8, 8], strides = [1, 1, 1]} : vector<4x8x8xf32> to vector<1x8x8xf32>
    %40 = vector.extract_strided_slice %38 {offsets = [1, 0, 0], sizes = [1, 8, 8], strides = [1, 1, 1]} : vector<4x8x8xf32> to vector<1x8x8xf32>
    %41 = vector.extract_strided_slice %38 {offsets = [2, 0, 0], sizes = [1, 8, 8], strides = [1, 1, 1]} : vector<4x8x8xf32> to vector<1x8x8xf32>
    %42 = vector.extract_strided_slice %38 {offsets = [3, 0, 0], sizes = [1, 8, 8], strides = [1, 1, 1]} : vector<4x8x8xf32> to vector<1x8x8xf32>
    %43 = tpu.concatenate %39, %40, %41, %42 in 2 : vector<1x8x8xf32>, vector<1x8x8xf32>, vector<1x8x8xf32>, vector<1x8x8xf32> -> vector<1x8x32xf32>
    %44 = vector.shape_cast %43 : vector<1x8x32xf32> to vector<8x32xf32>
    %c0_9 = arith.constant 0 : index
    %c0_10 = arith.constant 0 : index
    %45 = vector.load %arg4[%c0_9, %c0_10] : memref<32x32xf32, #tpu.memory_space<vmem>>, vector<32x32xf32>
    %cst_11 = arith.constant dense<0.000000e+00> : vector<8x32xf32>
    %46 = tpu.matmul %44, %45, %cst_11 {dimension_numbers = #tpu.dot_dimension_numbers<[1], [0], [0], [1], [0, 0, 1, 1], [], []>} : vector<8x32xf32>, vector<32x32xf32>, vector<8x32xf32> -> vector<8x32xf32>
    %c0_12 = arith.constant 0 : index
    %c0_13 = arith.constant 0 : index
    %47 = vector.load %arg5[%c0_12, %c0_13] : memref<1x32xf32, #tpu.memory_space<vmem>>, vector<1x32xf32>
    %48 = vector.broadcast %47 : vector<1x32xf32> to vector<8x32xf32>
    %49 = arith.addf %46, %48 : vector<8x32xf32>
    %50 = arith.addf %0, %49 : vector<8x32xf32>
    %c0_14 = arith.constant 0 : index
    %c0_15 = arith.constant 0 : index
    %51 = vector.load %arg6[%c0_14, %c0_15] : memref<32x16xf32, #tpu.memory_space<vmem>>, vector<32x16xf32>
    %cst_16 = arith.constant dense<0.000000e+00> : vector<8x16xf32>
    %52 = tpu.matmul %50, %51, %cst_16 {dimension_numbers = #tpu.dot_dimension_numbers<[1], [0], [0], [1], [0, 0, 1, 1], [], []>} : vector<8x32xf32>, vector<32x16xf32>, vector<8x16xf32> -> vector<8x16xf32>
    %c0_17 = arith.constant 0 : index
    %c0_18 = arith.constant 0 : index
    %53 = vector.load %arg7[%c0_17, %c0_18] : memref<1x16xf32, #tpu.memory_space<vmem>>, vector<1x16xf32>
    %54 = vector.broadcast %53 : vector<1x16xf32> to vector<8x16xf32>
    %55 = arith.addf %52, %54 : vector<8x16xf32>
    %c0_19 = arith.constant 0 : index
    %c0_20 = arith.constant 0 : index
    %56 = vector.load %arg8[%c0_19, %c0_20] : memref<16x32xf32, #tpu.memory_space<vmem>>, vector<16x32xf32>
    %cst_21 = arith.constant dense<0.000000e+00> : vector<8x32xf32>
    %57 = tpu.matmul %55, %56, %cst_21 {dimension_numbers = #tpu.dot_dimension_numbers<[1], [0], [0], [1], [0, 0, 1, 1], [], []>} : vector<8x16xf32>, vector<16x32xf32>, vector<8x32xf32> -> vector<8x32xf32>
    %c0_22 = arith.constant 0 : index
    %c0_23 = arith.constant 0 : index
    %58 = vector.load %arg9[%c0_22, %c0_23] : memref<1x32xf32, #tpu.memory_space<vmem>>, vector<1x32xf32>
    %59 = vector.broadcast %58 : vector<1x32xf32> to vector<8x32xf32>
    %60 = arith.addf %57, %59 : vector<8x32xf32>
    %61 = arith.addf %50, %60 : vector<8x32xf32>
    %c0_24 = arith.constant 0 : index
    %c0_25 = arith.constant 0 : index
    %62 = vector.load %arg10[%c0_24, %c0_25] : memref<8x32xf32, #tpu.memory_space<vmem>>, vector<8x32xf32>
    tpu.vector_store %arg10[%c0_24, %c0_25], %61 {strides = array<i32>} : memref<8x32xf32, #tpu.memory_space<vmem>>, vector<8x32xf32>,
    return
  }
  func.func @transform_0(%arg0: i32) -> (i32, i32) {
    %c0_i32 = arith.constant 0 : i32
    %c0_i32_0 = arith.constant 0 : i32
    return %arg0, %c0_i32 : i32, i32
  }
  func.func @transform_1(%arg0: i32) -> (i32, i32) {
    %c0_i32 = arith.constant 0 : i32
    %c0_i32_0 = arith.constant 0 : i32
    %c0_i32_1 = arith.constant 0 : i32
    return %c0_i32, %c0_i32_0 : i32, i32
  }
  func.func @transform_2(%arg0: i32) -> (i32, i32) {
    %c0_i32 = arith.constant 0 : i32
    %c0_i32_0 = arith.constant 0 : i32
    %c0_i32_1 = arith.constant 0 : i32
    return %c0_i32, %c0_i32_0 : i32, i32
  }
  func.func @transform_3(%arg0: i32) -> (i32, i32) {
    %c0_i32 = arith.constant 0 : i32
    %c0_i32_0 = arith.constant 0 : i32
    %c0_i32_1 = arith.constant 0 : i32
    return %c0_i32, %c0_i32_0 : i32, i32
  }
  func.func @transform_4(%arg0: i32) -> (i32, i32) {
    %c0_i32 = arith.constant 0 : i32
    %c0_i32_0 = arith.constant 0 : i32
    %c0_i32_1 = arith.constant 0 : i32
    return %c0_i32, %c0_i32_0 : i32, i32
  }
  func.func @transform_5(%arg0: i32) -> (i32, i32) {
    %c0_i32 = arith.constant 0 : i32
    %c0_i32_0 = arith.constant 0 : i32
    %c0_i32_1 = arith.constant 0 : i32
    return %c0_i32, %c0_i32_0 : i32, i32
  }
  func.func @transform_6(%arg0: i32) -> (i32, i32) {
    %c0_i32 = arith.constant 0 : i32
    %c0_i32_0 = arith.constant 0 : i32
    %c0_i32_1 = arith.constant 0 : i32
    return %c0_i32, %c0_i32_0 : i32, i32
  }
  func.func @transform_7(%arg0: i32) -> (i32, i32) {
    %c0_i32 = arith.constant 0 : i32
    %c0_i32_0 = arith.constant 0 : i32
    %c0_i32_1 = arith.constant 0 : i32
    return %c0_i32, %c0_i32_0 : i32, i32
  }
  func.func @transform_8(%arg0: i32) -> (i32, i32) {
    %c0_i32 = arith.constant 0 : i32
    %c0_i32_0 = arith.constant 0 : i32
    %c0_i32_1 = arith.constant 0 : i32
    return %c0_i32, %c0_i32_0 : i32, i32
  }
  func.func @transform_9(%arg0: i32) -> (i32, i32) {
    %c0_i32 = arith.constant 0 : i32
    %c0_i32_0 = arith.constant 0 : i32
    return %arg0, %c0_i32 : i32, i32
  }
}

</mosaic_0001>

<bundles_post_ra>
// kernel: tpu_custom_call.1
= control target key start
LH: loop header
LB: loop body
LE: loop exit
PB: predicated region body
PF: predicated region fallthrough
CT: control target
= control target key end

     0   :  { %14 = vsyncpa [#allocation3], 0  ;;  %s2213_s0 = inlined_call_operand.vmem [shape: f32[16,32], index: 0, kind: input, shape index: {}]   ;;  %s2214_s1 = inlined_call_operand.vmem [shape: f32[32,96], index: 1, kind: input, shape index: {}]   ;;  %s2215_s2 = inlined_call_operand.vmem [shape: f32[1,96], index: 2, kind: input, shape index: {}]   ;;  %s2216_s3 = inlined_call_operand.hbm [shape: f32[32,32], index: 3, kind: input, shape index: {}]   ;;  %s2217_s4 = inlined_call_operand.vmem [shape: f32[1,32], index: 4, kind: input, shape index: {}]   ;;  %s2218_s5 = inlined_call_operand.vmem [shape: f32[32,16], index: 5, kind: input, shape index: {}]   ;;  %s2219_s6 = inlined_call_operand.vmem [shape: f32[1,16], index: 6, kind: input, shape index: {}]   ;;  %s2220_s7 = inlined_call_operand.hbm [shape: f32[16,32], index: 7, kind: input, shape index: {}]   ;;  %s2221_s8 = inlined_call_operand.vmem [shape: f32[1,32], index: 8, kind: input, shape index: {}]   ;;  %s2222_s9 = inlined_call_operand.hbm [shape: f32[16,32], index: 9, kind: output, shape index: {}]  }
   0x1   :  { %15 = vsyncpa [#allocation6], 0 }
   0x2   :  { %16 = vsyncpa [#allocation4], 0 }
   0x3   :  { %18 = vsyncpa [#allocation4 + $0x1], 0  ;;  %s1921_s30 = smov 0   ;;  %s1923_s10 = smov 0  }
   0x4   :  { %s1925_s11 = smov 0   ;;  %s1927_s12 = smov 0  }
   0x5 LB: > { %2229 = sst [smem:[#allocation11_spill]] %s1849_s11  ;;  %s1942_s13 = sadd.s32 4294967295, %s1853_s12   ;;  %s1853_s12 = sphi %s1927_s12, %s2243_s12   ;;  %s1849_s11 = sphi %s1925_s11, %s2248_s11   ;;  %s1845_s10 = sphi %s1923_s10, %s2247_s10   ;;  %s1841_s30 = sphi %s1921_s30, %s2246_s30  }
   0x6   : > { %s1469_s14 = sadd.s32 4294967294, %s1853_s12   ;;  %s1946_s15 = sadd.s32 1, %s1853_s12  }
   0x7   : > { %2230 = sst [smem:[#allocation12_spill]] %s1946_s15  ;;  %s225_s16 = sadd.s32 1, %s1849_s11 }
   0x8   : > { %s222_s17 = ssub.s32 %s1853_s12, %s1946_s15  ;;  %p235_p0 = scmp.ne.s32.totalorder %s1849_s11, %s1845_s10 }
   0x9   : > { %p223_p1 = scmp.eq.s32.totalorder %s222_s17, 0  ;;  %p236_p2 = scmp.eq.s32.totalorder %s1942_s13, 1 }
   0xa   : > { %p241_p3 = scmp.ne.s32.totalorder %s1845_s10, %s1841_s30  ;;  %p242_p4 = scmp.eq.s32.totalorder %s1469_s14, 1 }
   0xb   : > { %s1957_s18 = scalar_select %p223_p1, %s1849_s11, %s225_s16  }
   0xc   : > { %p1959_p5 = por %p236_p2, %p235_p0  ;;  %p1963_p6 = por %p242_p4, %p241_p3 }
   0xd   : > { %2231 = sst [smem:[#allocation13_spill]] %s1957_s18  ;;  %p1470_p7 = scmp.ge.s32.totalorder %s1853_s12, 1 }
   0xe   : > { %s2232_s19 = scalar_select %p1959_p5, 1, 0 }
   0xf   : > { %s2233_s20 = scalar_select %p1963_p6, 1, 0 }
  0x10   : > { %p249_p8 = scmp.lt.s32.totalorder %s1853_s12, 3  ;;  %p2223_p9 = scmp.eq.s32.totalorder %s1942_s13, 0 }
  0x11   : > { %s1855_s22 = smov [#allocation2]   ;;  %s1856_s25 = smov [#allocation5]  }
  0x12   : > { %p1970_p10 = pnand %p1470_p7, %p249_p8  ;;  %s267_s23 = sshll.u32 %s1855_s22, 4  ;;  %s268_s23 = int_to_ptr.vmem [resolvable:$true] %s267_s23 }
  0x13   : > { %s289_s26 = sshll.u32 %s1856_s25, 4  ;;  %s1727_s29 = scalar_lea.hbm %s2216_s3, 512  ;;  %s1982_s26 = int_to_ptr.vmem [resolvable:$true] %s289_s26 }
  0x14   : > { %s2234_s21 = scalar_select %p1970_p10, 1, 0 }
  0x15   : > { %p1648_p11 = pneg %p1970_p10  ;;  %p1728_p13 = scmp.ne.s32.totalorder %s2216_s3, %s1727_s29 }
  0x16   : > { %p1734_p3 = scmp.lt.u32.totalorder %s1727_s29, %s2216_s3 }
  0x17   : > { %p1978_p12 = pnand %p2223_p9, %p1648_p11 }
  0x19   : > { %p1729_p0 = pneg %p1978_p12 }
  0x1b   : > { %p1730_p1 = pnand %p1729_p0, %p1728_p13 }
  0x1d   : > { %p1731_p2 = pneg %p1730_p1 }
  0x1f   : > { %p1736_p4 = pnand %p1734_p3, %p1731_p2 }
  0x21   : > { %1739 = shalt.err (!%p1736_p4)
}
  0x22   : > { %s1740_s25 = scalar_lea.vmem %s268_s23, 512  ;;  %p1748_p9 = scmp.lt.s32.totalorder %s268_s23, %s268_s23 }
  0x23   : > { %p1741_p7 = scmp.ne.s32.totalorder %s268_s23, %s1740_s25  ;;  %p1749_p6 = scmp.lt.s32.totalorder %s1740_s25, %s1740_s25 }
  0x25   : > { %p1743_p8 = pnand %p1741_p7, %p1729_p0  ;;  %p1750_p5 = por %p1749_p6, %p1748_p9 }
  0x27   : > { %p1744_p11 = pneg %p1743_p8 }
  0x29   : > { %p1751_p10 = pnand %p1750_p5, %p1744_p11 }
  0x2b   : > { %1754 = shalt.err (!%p1751_p10)
}
  0x2c   : > { %s1857_s27 = smov 128   ;;  %s1858_s28 = smov 8  }
  0x2d   : > { %1651 = dma.hbm_to_vmem [thread:$0]  (!%p1978_p12), %s2216_s3, 512, %s268_s23, [#allocation3], %s1857_s27, %s1857_s27, %s1858_s28  }
  0x2e   : > { %s1755_s22 = scalar_lea.hbm %s2220_s7, 256 }
  0x2f   : > { %p1756_p13 = scmp.ne.s32.totalorder %s2220_s7, %s1755_s22  ;;  %p1762_p9 = scmp.lt.u32.totalorder %s1755_s22, %s2220_s7 }
  0x31   : > { %p1758_p5 = pnand %p1756_p13, %p1729_p0 }
  0x33   : > { %p1759_p6 = pneg %p1758_p5 }
  0x35   : > { %p1764_p10 = pnand %p1762_p9, %p1759_p6 }
  0x37   : > { %1767 = shalt.err (!%p1764_p10)
}
  0x38   : > { %s1768_s23 = scalar_lea.vmem %s1982_s26, 256  ;;  %p1776_p4 = scmp.lt.s32.totalorder %s1982_s26, %s1982_s26 }
  0x39   : > { %p1769_p1 = scmp.ne.s32.totalorder %s1982_s26, %s1768_s23  ;;  %p1777_p7 = scmp.lt.s32.totalorder %s1768_s23, %s1768_s23 }
  0x3b   : > { %p1771_p2 = pnand %p1769_p1, %p1729_p0  ;;  %p1778_p8 = por %p1777_p7, %p1776_p4 }
  0x3d   : > { %p1772_p3 = pneg %p1771_p2 }
  0x3f   : > { %p1779_p11 = pnand %p1778_p8, %p1772_p3 }
  0x41   : > { %1782 = shalt.err (!%p1779_p11)
}
  0x42   : > { %1654 = dma.hbm_to_vmem [thread:$0]  (!%p1978_p12), %s2220_s7, 256, %s1982_s26, [#allocation6], %s1857_s27, %s1857_s27, %s1858_s28  }
  0x43   : > { %p2236_p13 = scmp.ne.s32.totalorder %s2234_s21, 0 }
  0x44   : > { %p2237_p5 = scmp.eq.s32.totalorder (!%p2236_p13), %s1942_s13, 0 }
  0x45   : > { %315 = sbr.rel (%p2236_p13) target bundleno = 2059 (0x80b), region = 56 }
  0x4c   : > { %1828 = dma.done.wait (%p2237_p5), [#allocation3], 512   ;;  %p2238_p0 = pmov %p2237_p5 }
  0x4e   : > { %1830 = vsyncadd (%p2238_p0), [#allocation3], 4294966784  ;;  %p2239_p6 = pmov %p2238_p0 }
  0x4f   : > { %p2240_p9 = pmov %p2238_p0 }
  0x50   : > { %1832 = dma.done.wait (%p2239_p6), [#allocation6], 256  }
  0x51   : > { %1834 = vsyncadd (%p2240_p9), [#allocation6], 4294967040  ;;  %p354_p10 = scmp.lt.s32.totalorder %s1942_s13, 1  ;;  %v1859_v0 = vmov 0.0|0.0   ;;  %vm1860_vm0 = vmmov 0   ;;  %v1861_v1 = vmov 0.0  }
  0x52   : > { %1617 = vmatprep.subr.bf16.mxu0 %v1859_v0  ;;  %1545 = vmatprep.mubr.msk.f32.mxu0 %vm1860_vm0, %v1861_v1  ;;  %v359_v2 = vld [vmem:[%s2214_s1] sm:$0xff]  ;;  %v360_v3 = vld [vmem:[%s2214_s1 + $0x8] sm:$0xff]  ;;  %v361_v4 = vld [vmem:[%s2214_s1 + $0x10] sm:$0xff]  ;;  %vm370_vm1 = vcmask 261120   ;;  %s1863_s21 = smov 120   ;;  %s1864_s24 = smov 96  }
  0x53   : > { %1548 = vmatprep.subr.mxu1 %v1861_v1  ;;  %1550 = vmatprep.mubr.msk.f32.mxu1 %vm1860_vm0, %v1861_v1  ;;  %s355_s18 = scalar_select %p354_p10, %s1942_s13, 1  ;;  %v1618_v5 = vpack.c.bf16 %v360_v3, %v359_v2  ;;  %v362_v6 = vld [vmem:[%s2214_s1 + $0x18] sm:$0xff]  ;;  %v1479_v9 = vld [vmem:[%s2215_s2] ss:$0 sm:$0xff]  ;;  %vm453_vm2 = vcmask 64512   ;;  %vm1117_vm3 = vcmask 130048  }
  0x54   : > { %v1621_v7 = vpack.c.bf16 %v362_v6, %v361_v4  ;;  %s1865_s26 = smov 112   ;;  %s1866_s27 = smov 64   ;;  %vm1119_vm4 = vcmask 195584  }
  0x55   : > { %s1478_s17 = sshll.u32 %s355_s18, 3  ;;  %1619 = vmatpush3.bf16.msra.mxu0 %v1618_v5  ;;  %s1862_s18 = smov 104  }
  0x56   : > { %1620 = vmatprep.subr.bf16.mxu0 %v1859_v0  ;;  %s357_s23 = scalar_lea.vmem %s2213_s0, %s1478_s17  ;;  %s1867_s17 = smov 8  }
  0x57   : > { %v2065_v8 = vld [vmem:[%s357_s23] sm:$0xff]  ;;  %s1868_s22 = smov 24   ;;  %s1869_s25 = smov 16  }
  0x58   : > { %s351_s28 = sand.u32 1, %s1845_s10   ;;  %p2241_p1 = scmp.ne.s32.totalorder %s2232_s19, 0 }
  0x59   : > { %1622 = vmatpush3.bf16.msra.mxu0 %v1621_v7  ;;  %s1477_s29 = sshll.u32 %s351_s28, 3 }
  0x5a   : > { %1558 = vmatprep.subr.mxu0 %v1861_v1 }
  0x5c   : > { %1546 = vmatmul.mubr.msk.f32.vlgmr.msra.gmra.mrb[0].mxu0 %vm370_vm1, %v2065_v8 }
  0x5d   : > { %1560 = vmatprep.mubr.msk.f32.mxu0 %vm1860_vm0, %v1861_v1 }
 0x12f   : > { %v440_v10 = vpop.f32.mrb[0].mxu0 }
 0x130   : > { %v441_v11 = vadd.f32 %v1479_v9, %v440_v10  ;;  %v1547_v12 = vpop.f32.mrb[1].mxu0  ;;  %v1121_v9 = vld [vmem:[#allocation2] sm:$0xff]  ;;  %v1122_v10 = vld [vmem:[#allocation2 + $0x8] sm:$0xff] }
 0x131   : > { %v1123_v12 = vld [vmem:[#allocation2 + $0x10] sm:$0xff] }
 0x132   : > { %449 = vrot.lane.b32.xlu1 %v441_v11, %s1862_s18  ;;  %445 = vrot.lane.b32.xlu0 %v441_v11, %s1863_s21  ;;  %s1375_s18 = scalar_lea.sflag [#allocation4], %s351_s28 }
 0x136   : > { %451 = vrot.lane.b32.xlu1 %v441_v11, %s1864_s24  ;;  %447 = vrot.lane.b32.xlu0 %v441_v11, %s1865_s26 }
 0x1a4   : > { %v2075_v13 = vpop.permute.xlu1 %449  ;;  %v446_v14 = vpop.permute.xlu0 %445 }
 0x1a5   : > { %528 = vrot.lane.b32.xlu0 %v446_v14, %s1864_s24 }
 0x1a8   : > { %v452_v15 = vpop.permute.xlu1 %451  ;;  %v2077_v16 = vpop.permute.xlu0 %447 }
 0x1a9   : > { %1549 = vmatpush3.xpose.msk.msra.mxu1 %vm453_vm2, %v452_v15  ;;  %680 = vrot.lane.b32.xlu0 %v2075_v13, %s1864_s24  ;;  %v1206_v15 = vld [vmem:[%s2218_s5] sm:$0xff] }
 0x1aa   : > { %604 = vrot.lane.b32.xlu1 %v2077_v16, %s1864_s24  ;;  %1553 = vmatprep.subr.mxu1 %v1861_v1 }
 0x1ac   : > { %1551 = vmatmul.mubr.msk.f32.vlgmr.msra.gmra.mrb[0].mxu1 %vm453_vm2, %v441_v11 }
 0x1ad   : > { %1555 = vmatprep.mubr.msk.f32.mxu1 %vm1860_vm0, %v1861_v1 }
 0x217   : > { %v529_v17 = vpop.permute.xlu0 %528 }
 0x218   : > { %1554 = vmatpush3.xpose.msk.msra.mxu1 %vm453_vm2, %v529_v17 }
 0x219   : > { %1563 = vmatprep.subr.mxu1 %v1861_v1 }
 0x21b   : > { %1556 = vmatmul.mubr.msk.f32.vlgmr.msra.gmra.mrb[2].mxu1 %vm453_vm2, %v446_v14  ;;  %v681_v18 = vpop.permute.xlu0 %680 }
 0x21c   : > { %v605_v19 = vpop.permute.xlu1 %604  ;;  %1564 = vmatpush3.xpose.msk.msra.mxu1 %vm453_vm2, %v681_v18  ;;  %1565 = vmatprep.mubr.msk.f32.mxu1 %vm1860_vm0, %v1861_v1 }
 0x21d   : > { %1559 = vmatpush3.xpose.msk.msra.mxu0 %vm453_vm2, %v605_v19  ;;  %1573 = vmatprep.subr.mxu1 %v1861_v1 }
 0x21e   : > { %1568 = vmatprep.subr.mxu0 %v1861_v1 }
 0x21f   : > { %1566 = vmatmul.mubr.msk.f32.vlgmr.msra.gmra.mrb[4].mxu1 %vm453_vm2, %v2075_v13 }
 0x220   : > { %1561 = vmatmul.mubr.msk.f32.vlgmr.msra.gmra.mrb[2].mxu0 %vm453_vm2, %v2077_v16  ;;  %1575 = vmatprep.mubr.msk.f32.mxu1 %vm1860_vm0, %v1861_v1 }
 0x221   : > { %1570 = vmatprep.mubr.msk.f32.mxu0 %vm1860_vm0, %v1861_v1 }
 0x27f   : > { %v524_v20 = vpop.f32.mrb[0].mxu1 }
 0x280   : > { %v1552_v21 = vpop.f32.mrb[1].mxu1  ;;  %v756_v22 = vsel %vm453_vm2, %v524_v20, -inf }
 0x281   : > { %757 = vmax.xlane.f32.xlu1 %v756_v22 }
 0x2ee   : > { %v600_v23 = vpop.f32.mrb[2].mxu1 }
 0x2ef   : > { %v1557_v24 = vpop.f32.mrb[3].mxu1  ;;  %v759_v25 = vsel %vm453_vm2, %v600_v23, -inf }
 0x2f0   : > { %760 = vmax.xlane.f32.xlu0 %v759_v25 }
 0x2f2   : > { %v752_v26 = vpop.f32.mrb[4].mxu1 }
 0x2f3   : > { %v676_v27 = vpop.f32.mrb[2].mxu0  ;;  %v1567_v28 = vpop.f32.mrb[5].mxu1  ;;  %v765_v29 = vsel %vm453_vm2, %v752_v26, -inf }
 0x2f4   : > { %v1562_v30 = vpop.f32.mrb[3].mxu0  ;;  %766 = vmax.xlane.f32.xlu1 %v765_v29  ;;  %v762_v31 = vsel %vm453_vm2, %v676_v27, -inf  ;;  %v1208_v29 = vld [vmem:[%s2218_s5 + $0x10] sm:$0xff] }
 0x2f5   : > { %763 = vmax.xlane.f32.xlu0 %v762_v31  ;;  %v1209_v30 = vld [vmem:[%s2218_s5 + $0x18] sm:$0xff] }
 0x2f6   : > { %v1633_v31 = vpack.c.bf16 %v1209_v30, %v1208_v29 }
 0x305   : > { %876 = vrot.lane.b32.xlu1 %v446_v14, %s1866_s27 }
 0x30b   : > { %800 = vrot.lane.b32.xlu0 %v441_v11, %s1866_s27  ;;  %v1624_v11 = vpack.c.bf16 %v1122_v10, %v1121_v9 }
 0x30e   : > { %v758_v32 = vpop.xlane.xlu1 %757 }
 0x30f   : > { %v768_v33 = vsub.f32 %v524_v20, %v758_v32  ;;  %v1493_v32 = vld [vmem:[%s2217_s4] ss:$0 sm:$0xff] }
 0x311   : > { %v772_v34 = vmul.f32 1.442695, %v768_v33 }
 0x313   : > { %1711 = vpow2.f32 %v772_v34 }
 0x31d   : > { %v1712_v35 = vpop.eup %1711 }
 0x31e   : > { %v780_v36 = vsel %vm453_vm2, %v1712_v35, 0.0 }
 0x32a   : > { %781 = vadd.xlane.f32.xlu0 %v780_v36  ;;  %v1290_v36 = vld [vmem:[#allocation5] sm:$0xff] }
 0x37d   : > { %v761_v37 = vpop.xlane.xlu0 %760 }
 0x37e   : > { %v769_v38 = vsub.f32 %v600_v23, %v761_v37  ;;  %v1291_v37 = vld [vmem:[#allocation5 + $0x8] sm:$0xff] }
 0x380   : > { %v774_v39 = vmul.f32 1.442695, %v769_v38  ;;  %v1636_v38 = vpack.c.bf16 %v1291_v37, %v1290_v36 }
 0x381   : > { %v767_v40 = vpop.xlane.xlu1 %766 }
 0x382   : > { %1713 = vpow2.f32 %v774_v39  ;;  %v771_v41 = vsub.f32 %v752_v26, %v767_v40  ;;  %v764_v42 = vpop.xlane.xlu0 %763  ;;  %v1495_v39 = vld [vmem:[%s2219_s6] ss:$0 sm:$0xff] }
 0x383   : > { %v770_v43 = vsub.f32 %v676_v27, %v764_v42 }
 0x384   : > { %v778_v44 = vmul.f32 1.442695, %v771_v41 }
 0x385   : > { %v776_v45 = vmul.f32 1.442695, %v770_v43  ;;  %v877_v46 = vpop.permute.xlu1 %876 }
 0x386   : > { %1715 = vpow2.f32 %v778_v44  ;;  %v801_v47 = vpop.permute.xlu0 %800  ;;  %1574 = vmatpush3.msra.mxu1 %v877_v46 }
 0x387   : > { %1717 = vpow2.f32 %v776_v45  ;;  %1569 = vmatpush3.msra.mxu0 %v801_v47  ;;  %1583 = vmatprep.subr.mxu1 %v1861_v1 }
 0x388   : > { %1578 = vmatprep.subr.mxu0 %v1861_v1 }
 0x38c   : > { %v1714_v48 = vpop.eup %1713 }
 0x38d   : > { %v783_v49 = vsel %vm453_vm2, %v1714_v48, 0.0 }
 0x38e   : > { %784 = vadd.xlane.f32.xlu1 %v783_v49 }
 0x390   : > { %v1716_v50 = vpop.eup %1715 }
 0x391   : > { %v1718_v51 = vpop.eup %1717  ;;  %v789_v52 = vsel %vm453_vm2, %v1716_v50, 0.0 }
 0x392   : > { %790 = vadd.xlane.f32.xlu1 %v789_v52  ;;  %v786_v53 = vsel %vm453_vm2, %v1718_v51, 0.0 }
 0x393   : > { %787 = vadd.xlane.f32.xlu0 %v786_v53 }
 0x3a3   : > { %952 = vrot.lane.b32.xlu1 %v2077_v16, %s1866_s27  ;;  %v1207_v16 = vld [vmem:[%s2218_s5 + $0x8] sm:$0xff] }
 0x3a4   : > { %v1630_v17 = vpack.c.bf16 %v1207_v16, %v1206_v15 }
 0x3a9   : > { %1028 = vrot.lane.b32.xlu0 %v2075_v13, %s1866_s27  ;;  %v1124_v13 = vld [vmem:[#allocation2 + $0x18] sm:$0xff] }
 0x3aa   : > { %v1627_v14 = vpack.c.bf16 %v1124_v13, %v1123_v12 }
 0x3b7   : > { %v782_v54 = vpop.xlane.xlu0 %781 }
 0x3b8   : > { %1719 = vrcp.f32 %v782_v54 }
 0x3c2   : > { %v1720_v55 = vpop.eup %1719 }
 0x3c3   : > { %v796_v56 = vmul.f32 %v1720_v55, %v1712_v35 }
 0x3c5   : > { %1571 = vmatmul.mubr.msk.f32.vlgmr.msra.gmra.mrb[4].mxu0 %vm453_vm2, %v796_v56 }
 0x3c6   : > { %1580 = vmatprep.mubr.msk.f32.mxu0 %vm1860_vm0, %v1861_v1 }
 0x41b   : > { %v785_v57 = vpop.xlane.xlu1 %784 }
 0x41c   : > { %1721 = vrcp.f32 %v785_v57 }
 0x41f   : > { %v791_v58 = vpop.xlane.xlu1 %790 }
 0x420   : > { %1723 = vrcp.f32 %v791_v58  ;;  %v788_v59 = vpop.xlane.xlu0 %787 }
 0x421   : > { %1725 = vrcp.f32 %v788_v59 }
 0x423   : > { %v953_v60 = vpop.permute.xlu1 %952 }
 0x424   : > { %1579 = vmatpush3.msra.mxu0 %v953_v60  ;;  %v1029_v63 = vpop.permute.xlu0 %1028 }
 0x425   : > { %1623 = vmatprep.subr.bf16.mxu0 %v1859_v0 }
 0x426   : > { %v1722_v61 = vpop.eup %1721 }
 0x427   : > { %v797_v62 = vmul.f32 %v1722_v61, %v1714_v48 }
 0x429   : > { %1576 = vmatmul.mubr.msk.f32.vlgmr.msra.gmra.mrb[6].mxu1 %vm453_vm2, %v797_v62 }
 0x42a   : > { %v1724_v2 = vpop.eup %1723  ;;  %1584 = vmatpush3.msra.mxu1 %v1029_v63  ;;  %1585 = vmatprep.mubr.msk.f32.mxu1 %vm1860_vm0, %v1861_v1 }
 0x42b   : > { %v1726_v3 = vpop.eup %1725  ;;  %v799_v4 = vmul.f32 %v1724_v2, %v1716_v50  ;;  %1629 = vmatprep.subr.bf16.mxu1 %v1859_v0 }
 0x42c   : > { %v798_v5 = vmul.f32 %v1726_v3, %v1718_v51 }
 0x42d   : > { %1586 = vmatmul.mubr.msk.f32.vlgmr.msra.gmra.mrb[8].mxu1 %vm453_vm2, %v799_v4 }
 0x42e   : > { %1581 = vmatmul.mubr.msk.f32.vlgmr.msra.gmra.mrb[6].mxu0 %vm453_vm2, %v798_v5  ;;  %1607 = vmatprep.mubr.msk.f32.mxu1 %vm1860_vm0, %v1861_v1 }
 0x42f   : > { %1596 = vmatprep.mubr.msk.f32.mxu0 %vm1860_vm0, %v1861_v1  ;;  %1625 = vmatpush3.bf16.msra.mxu0 %v1624_v11 }
 0x430   : > { %1626 = vmatprep.subr.bf16.mxu0 %v1859_v0  ;;  %1631 = vmatpush3.bf16.msra.mxu1 %v1630_v17 }
 0x431   : > { %1632 = vmatprep.subr.bf16.mxu1 %v1859_v0 }
 0x433   : > { %1628 = vmatpush3.bf16.msra.mxu0 %v1627_v14 }
 0x434   : > { %1635 = vmatprep.subr.bf16.mxu0 %v1859_v0  ;;  %1634 = vmatpush3.bf16.msra.mxu1 %v1633_v31 }
 0x498   : > { %v872_v6 = vpop.f32.mrb[4].mxu0 }
 0x499   : > { %v1572_v7 = vpop.f32.mrb[5].mxu0 }
 0x4fc   : > { %v948_v18 = vpop.f32.mrb[6].mxu1 }
 0x4fd   : > { %1105 = vrot.lane.b32.xlu1 %v948_v18, %s1867_s17  ;;  %v1577_v19 = vpop.f32.mrb[7].mxu1  ;;  %s1500_s17 = sshll.u32 %s1942_s13, 7  ;;  %s1870_s13 = smov [#allocation7]  }
 0x4fe   : > { %s2170_s15 = scalar_lea.hbm %s2222_s9, %s1500_s17  ;;  %s1787_s24 = sshll.u32 %s1870_s13, 4  ;;  %s1788_s24 = int_to_ptr.vmem [resolvable:$false] %s1787_s24 }
 0x4ff   : > { %s1789_s26 = scalar_lea.vmem %s1788_s24, 256 }
 0x500   : > { %v1100_v20 = vpop.f32.mrb[8].mxu1 }
 0x501   : > { %v1024_v21 = vpop.f32.mrb[6].mxu0  ;;  %1113 = vrot.lane.b32.xlu1 %v1100_v20, %s1868_s22  ;;  %v1587_v22 = vpop.f32.mrb[9].mxu1  ;;  %s353_s22 = scalar_lea.vmem [#allocation7], %s1477_s29 }
 0x502   : > { %1109 = vrot.lane.b32.xlu0 %v1024_v21, %s1869_s25  ;;  %v1582_v23 = vpop.f32.mrb[7].mxu0  ;;  %s1388_s25 = sshll.u32 %s353_s22, 4  ;;  %s2172_s25 = int_to_ptr.vmem [resolvable:$true] %s1388_s25 }
 0x503   : > { %s1783_s21 = scalar_lea.vmem %s2172_s25, 128  ;;  %p1790_p4 = scmp.lt.s32.totalorder %s2172_s25, %s1788_s24 }
 0x504   : > { %p1784_p12 = scmp.ne.s32.totalorder %s2172_s25, %s1783_s21  ;;  %p1791_p7 = scmp.lt.s32.totalorder %s1789_s26, %s1783_s21 }
 0x506   : > { %p1785_p2 = pnand %p1784_p12, %p2241_p1  ;;  %p1792_p8 = por %p1791_p7, %p1790_p4 }
 0x508   : > { %p1786_p3 = pneg %p1785_p2 }
 0x50a   : > { %p1793_p11 = pnand %p1792_p8, %p1786_p3 }
 0x56f   : > { %v1106_v24 = vpop.permute.xlu1 %1105 }
 0x570   : > { %v1116_v26 = vsel %vm453_vm2, %v872_v6, %v1106_v24 }
 0x573   : > { %v1114_v25 = vpop.permute.xlu1 %1113 }
 0x574   : > { %v1110_v27 = vpop.permute.xlu0 %1109 }
 0x575   : > { %v1118_v0 = vsel %vm1117_vm3, %v1116_v26, %v1110_v27 }
 0x576   : > { %v1120_v28 = vsel %vm1119_vm4, %v1118_v0, %v1114_v25 }
 0x577   : > { %1597 = vmatmul.mubr.msk.f32.vlgmr.msra.gmra.mrb[8].mxu0 %vm370_vm1, %v1120_v28 }
 0x578   : > { %1614 = vmatprep.mubr.msk.f32.mxu0 %vm1860_vm0, %v1861_v1  ;;  %1637 = vmatpush3.bf16.msra.mxu0 %v1636_v38 }
 0x64a   : > { %v1201_v33 = vpop.f32.mrb[8].mxu0 }
 0x64b   : > { %v1202_v34 = vadd.f32 %v1493_v32, %v1201_v33  ;;  %v1598_v35 = vpop.f32.mrb[9].mxu0 }
 0x64d   : > { %v1205_v1 = vadd.f32 %v1202_v34, %v2065_v8  ;;  %v1497_v8 = vld [vmem:[%s2221_s8] ss:$0 sm:$0xff] }
 0x64f   : > { %1608 = vmatmul.mubr.msk.f32.vlgmr.msra.gmra.mrb[10].mxu1 %vm370_vm1, %v1205_v1 }
 0x722   : > { %v1286_v40 = vpop.f32.mrb[10].mxu1 }
 0x723   : > { %v1287_v41 = vadd.f32 %v1495_v39, %v1286_v40  ;;  %v1609_v42 = vpop.f32.mrb[11].mxu1 }
 0x725   : > { %1615 = vmatmul.mubr.msk.f32.vlgmr.msra.gmra.mrb[10].mxu0 %vm1117_vm3, %v1287_v41 }
 0x7f8   : > { %v1368_v43 = vpop.f32.mrb[10].mxu0 }
 0x7f9   : > { %v1369_v44 = vadd.f32 %v1497_v8, %v1368_v43  ;;  %v1616_v45 = vpop.f32.mrb[11].mxu0 }
 0x7fb   : > { %v1372_v46 = vadd.f32 %v1369_v44, %v1205_v1 }
 0x7fd   : > { %1373 = vst.msk [vmem:[%s353_s22] sm:$0xff] %vm370_vm1, %v1372_v46 }
 0x7fe   : > { %1796 = shalt.err (!%p1793_p11)
}
 0x7ff   : > { %s1797_s27 = scalar_lea.hbm %s2170_s15, 128  ;;  %s1801_s14 = scalar_lea.hbm %s2222_s9, 256 }
 0x800   : > { %p1798_p13 = scmp.ne.s32.totalorder %s2170_s15, %s1797_s27  ;;  %p1802_p6 = scmp.lt.u32.totalorder %s2170_s15, %s2222_s9 }
 0x801   : > { %p1803_p9 = scmp.lt.u32.totalorder %s1801_s14, %s1797_s27  ;;  %p1805_p12 = scmp.lt.u32.totalorder %s1797_s27, %s2170_s15 }
 0x802   : > { %p1799_p5 = pnand %p1798_p13, %p2241_p1 }
 0x803   : > { %p1804_p10 = por %p1803_p9, %p1802_p6 }
 0x804   : > { %p1800_p0 = pneg %p1799_p5 }
 0x805   : > { %p1806_p2 = por %p1805_p12, %p1804_p10 }
 0x807   : > { %p1807_p3 = pnand %p1806_p2, %p1800_p0 }
 0x809   : > { %1810 = shalt.err (!%p1807_p3)
}
 0x80a   : > { %1646 = dma.vmem_to_hbm [thread:$0]  (%p2241_p1), %s2172_s25, 128, %s2170_s15, %s1375_s18  }
 0x80b PF: > { %p1663_p4 = scmp.ge.s32.totalorder %s1853_s12, 2  ;;  %s1400_s22 = sand.u32 1, %s1841_s30  }
 0x80c   : > { %p2242_p7 = scmp.ne.s32.totalorder %s2233_s20, 0  ;;  %s1401_s23 = scalar_lea.sflag [#allocation4], %s1400_s22 }
 0x80e   : > { %p1656_p8 = pnand %p1663_p4, %p2242_p7 }
 0x810   : > { %1836 = dma.done.wait (!%p1656_p8), %s1401_s23, 128  }
 0x811   : > { %1838 = vsyncadd (!%p1656_p8), %s1401_s23, 4294967168  ;;  %s2243_s12 = sld [smem:[#allocation12_spill]]  ;;  %s2244_s11 = sld [smem:[#allocation11_spill]] }
 0x812   : > { %s2245_s21 = sld [smem:[#allocation13_spill]]  ;;  %s2246_s30 = smov %s1845_s10 }
 0x817   : > { %p21_p11 = scmp.ge.s32.totalorder %s2243_s12, 4   ;;  %s2247_s10 = smov %s2244_s11 }
 0x818   : > { %s2248_s11 = smov %s2245_s21 }
 0x819   :  { %23 = sbr.rel (!%p21_p11) target bundleno = 5 (0x5), region = 100 }
 0x820   :  { %1406 = vsyncpa [#allocation3], 1 }
 0x821   :  { %1408 = vsyncpa [#allocation3 + $0x1], 1 }
 0x822   :  { %1409 = vsyncpa [#allocation6], 1 }
 0x823   :  { %1410 = vsyncpa [#allocation4], 1 }
 0x824   :  { %1412 = vsyncpa [#allocation4 + $0x1], 1 }

// kernel: tpu_custom_call.1
= control target key start
LH: loop header
LB: loop body
LE: loop exit
PB: predicated region body
PF: predicated region fallthrough
CT: control target
= control target key end

     0   :  { %14 = vsyncpa [#allocation3], 0  ;;  %s2213_s0 = inlined_call_operand.vmem [shape: f32[16,32], index: 0, kind: input, shape index: {}]   ;;  %s2214_s1 = inlined_call_operand.vmem [shape: f32[32,96], index: 1, kind: input, shape index: {}]   ;;  %s2215_s2 = inlined_call_operand.vmem [shape: f32[1,96], index: 2, kind: input, shape index: {}]   ;;  %s2216_s3 = inlined_call_operand.hbm [shape: f32[32,32], index: 3, kind: input, shape index: {}]   ;;  %s2217_s4 = inlined_call_operand.vmem [shape: f32[1,32], index: 4, kind: input, shape index: {}]   ;;  %s2218_s5 = inlined_call_operand.vmem [shape: f32[32,16], index: 5, kind: input, shape index: {}]   ;;  %s2219_s6 = inlined_call_operand.vmem [shape: f32[1,16], index: 6, kind: input, shape index: {}]   ;;  %s2220_s7 = inlined_call_operand.hbm [shape: f32[16,32], index: 7, kind: input, shape index: {}]   ;;  %s2221_s8 = inlined_call_operand.vmem [shape: f32[1,32], index: 8, kind: input, shape index: {}]   ;;  %s2222_s9 = inlined_call_operand.hbm [shape: f32[16,32], index: 9, kind: output, shape index: {}]  }
   0x1   :  { %15 = vsyncpa [#allocation6], 0 }
   0x2   :  { %16 = vsyncpa [#allocation4], 0 }
   0x3   :  { %18 = vsyncpa [#allocation4 + $0x1], 0  ;;  %s1921_s30 = smov 0   ;;  %s1923_s10 = smov 0  }
   0x4   :  { %s1925_s11 = smov 0   ;;  %s1927_s12 = smov 0  }
   0x5 LB: > { %2229 = sst [smem:[#allocation11_spill]] %s1849_s11  ;;  %s1942_s13 = sadd.s32 4294967295, %s1853_s12   ;;  %s1853_s12 = sphi %s1927_s12, %s2243_s12   ;;  %s1849_s11 = sphi %s1925_s11, %s2248_s11   ;;  %s1845_s10 = sphi %s1923_s10, %s2247_s10   ;;  %s1841_s30 = sphi %s1921_s30, %s2246_s30  }
   0x6   : > { %s1469_s14 = sadd.s32 4294967294, %s1853_s12   ;;  %s1946_s15 = sadd.s32 1, %s1853_s12  }
   0x7   : > { %2230 = sst [smem:[#allocation12_spill]] %s1946_s15  ;;  %s225_s16 = sadd.s32 1, %s1849_s11 }
   0x8   : > { %s222_s17 = ssub.s32 %s1853_s12, %s1946_s15  ;;  %p235_p0 = scmp.ne.s32.totalorder %s1849_s11, %s1845_s10 }
   0x9   : > { %p223_p1 = scmp.eq.s32.totalorder %s222_s17, 0  ;;  %p236_p2 = scmp.eq.s32.totalorder %s1942_s13, 1 }
   0xa   : > { %p241_p3 = scmp.ne.s32.totalorder %s1845_s10, %s1841_s30  ;;  %p242_p4 = scmp.eq.s32.totalorder %s1469_s14, 1 }
   0xb   : > { %s1957_s18 = scalar_select %p223_p1, %s1849_s11, %s225_s16  }
   0xc   : > { %p1959_p5 = por %p236_p2, %p235_p0  ;;  %p1963_p6 = por %p242_p4, %p241_p3 }
   0xd   : > { %2231 = sst [smem:[#allocation13_spill]] %s1957_s18  ;;  %p1470_p7 = scmp.ge.s32.totalorder %s1853_s12, 1 }
   0xe   : > { %s2232_s19 = scalar_select %p1959_p5, 1, 0 }
   0xf   : > { %s2233_s20 = scalar_select %p1963_p6, 1, 0 }
  0x10   : > { %p249_p8 = scmp.lt.s32.totalorder %s1853_s12, 3  ;;  %p2223_p9 = scmp.eq.s32.totalorder %s1942_s13, 0 }
  0x11   : > { %s1855_s22 = smov [#allocation2]   ;;  %s1856_s25 = smov [#allocation5]  }
  0x12   : > { %p1970_p10 = pnand %p1470_p7, %p249_p8  ;;  %s267_s23 = sshll.u32 %s1855_s22, 4  ;;  %s268_s23 = int_to_ptr.vmem [resolvable:$true] %s267_s23 }
  0x13   : > { %s289_s26 = sshll.u32 %s1856_s25, 4  ;;  %s1727_s29 = scalar_lea.hbm %s2216_s3, 512  ;;  %s1982_s26 = int_to_ptr.vmem [resolvable:$true] %s289_s26 }
  0x14   : > { %s2234_s21 = scalar_select %p1970_p10, 1, 0 }
  0x15   : > { %p1648_p11 = pneg %p1970_p10  ;;  %p1728_p13 = scmp.ne.s32.totalorder %s2216_s3, %s1727_s29 }
  0x16   : > { %p1734_p3 = scmp.lt.u32.totalorder %s1727_s29, %s2216_s3 }
  0x17   : > { %p1978_p12 = pnand %p2223_p9, %p1648_p11 }
  0x19   : > { %p1729_p0 = pneg %p1978_p12 }
  0x1b   : > { %p1730_p1 = pnand %p1729_p0, %p1728_p13 }
  0x1d   : > { %p1731_p2 = pneg %p1730_p1 }
  0x1f   : > { %p1736_p4 = pnand %p1734_p3, %p1731_p2 }
  0x21   : > { %1739 = shalt.err (!%p1736_p4)
}
  0x22   : > { %s1740_s25 = scalar_lea.vmem %s268_s23, 512  ;;  %p1748_p9 = scmp.lt.s32.totalorder %s268_s23, %s268_s23 }
  0x23   : > { %p1741_p7 = scmp.ne.s32.totalorder %s268_s23, %s1740_s25  ;;  %p1749_p6 = scmp.lt.s32.totalorder %s1740_s25, %s1740_s25 }
  0x25   : > { %p1743_p8 = pnand %p1741_p7, %p1729_p0  ;;  %p1750_p5 = por %p1749_p6, %p1748_p9 }
  0x27   : > { %p1744_p11 = pneg %p1743_p8 }
  0x29   : > { %p1751_p10 = pnand %p1750_p5, %p1744_p11 }
  0x2b   : > { %1754 = shalt.err (!%p1751_p10)
}
  0x2c   : > { %s1857_s27 = smov 128   ;;  %s1858_s28 = smov 8  }
  0x2d   : > { %1651 = dma.hbm_to_vmem [thread:$0]  (!%p1978_p12), %s2216_s3, 512, %s268_s23, [#allocation3], %s1857_s27, %s1857_s27, %s1858_s28  }
  0x2e   : > { %s1755_s22 = scalar_lea.hbm %s2220_s7, 256 }
  0x2f   : > { %p1756_p13 = scmp.ne.s32.totalorder %s2220_s7, %s1755_s22  ;;  %p1762_p9 = scmp.lt.u32.totalorder %s1755_s22, %s2220_s7 }
  0x31   : > { %p1758_p5 = pnand %p1756_p13, %p1729_p0 }
  0x33   : > { %p1759_p6 = pneg %p1758_p5 }
  0x35   : > { %p1764_p10 = pnand %p1762_p9, %p1759_p6 }
  0x37   : > { %1767 = shalt.err (!%p1764_p10)
}
  0x38   : > { %s1768_s23 = scalar_lea.vmem %s1982_s26, 256  ;;  %p1776_p4 = scmp.lt.s32.totalorder %s1982_s26, %s1982_s26 }
  0x39   : > { %p1769_p1 = scmp.ne.s32.totalorder %s1982_s26, %s1768_s23  ;;  %p1777_p7 = scmp.lt.s32.totalorder %s1768_s23, %s1768_s23 }
  0x3b   : > { %p1771_p2 = pnand %p1769_p1, %p1729_p0  ;;  %p1778_p8 = por %p1777_p7, %p1776_p4 }
  0x3d   : > { %p1772_p3 = pneg %p1771_p2 }
  0x3f   : > { %p1779_p11 = pnand %p1778_p8, %p1772_p3 }
  0x41   : > { %1782 = shalt.err (!%p1779_p11)
}
  0x42   : > { %1654 = dma.hbm_to_vmem [thread:$0]  (!%p1978_p12), %s2220_s7, 256, %s1982_s26, [#allocation6], %s1857_s27, %s1857_s27, %s1858_s28  }
  0x43   : > { %p2236_p13 = scmp.ne.s32.totalorder %s2234_s21, 0 }
  0x44   : > { %p2237_p5 = scmp.eq.s32.totalorder (!%p2236_p13), %s1942_s13, 0 }
  0x45   : > { %315 = sbr.rel (%p2236_p13) target bundleno = 2059 (0x80b), region = 56 }
  0x4c   : > { %1828 = dma.done.wait (%p2237_p5), [#allocation3], 512   ;;  %p2238_p0 = pmov %p2237_p5 }
  0x4e   : > { %1830 = vsyncadd (%p2238_p0), [#allocation3], 4294966784  ;;  %p2239_p6 = pmov %p2238_p0 }
  0x4f   : > { %p2240_p9 = pmov %p2238_p0 }
  0x50   : > { %1832 = dma.done.wait (%p2239_p6), [#allocation6], 256  }
  0x51   : > { %1834 = vsyncadd (%p2240_p9), [#allocation6], 4294967040  ;;  %p354_p10 = scmp.lt.s32.totalorder %s1942_s13, 1  ;;  %v1859_v0 = vmov 0.0|0.0   ;;  %vm1860_vm0 = vmmov 0   ;;  %v1861_v1 = vmov 0.0  }
  0x52   : > { %1617 = vmatprep.subr.bf16.mxu0 %v1859_v0  ;;  %1545 = vmatprep.mubr.msk.f32.mxu0 %vm1860_vm0, %v1861_v1  ;;  %v359_v2 = vld [vmem:[%s2214_s1] sm:$0xff]  ;;  %v360_v3 = vld [vmem:[%s2214_s1 + $0x8] sm:$0xff]  ;;  %v361_v4 = vld [vmem:[%s2214_s1 + $0x10] sm:$0xff]  ;;  %vm370_vm1 = vcmask 261120   ;;  %s1863_s21 = smov 120   ;;  %s1864_s24 = smov 96  }
  0x53   : > { %1548 = vmatprep.subr.mxu1 %v1861_v1  ;;  %1550 = vmatprep.mubr.msk.f32.mxu1 %vm1860_vm0, %v1861_v1  ;;  %s355_s18 = scalar_select %p354_p10, %s1942_s13, 1  ;;  %v1618_v5 = vpack.c.bf16 %v360_v3, %v359_v2  ;;  %v362_v6 = vld [vmem:[%s2214_s1 + $0x18] sm:$0xff]  ;;  %v1479_v9 = vld [vmem:[%s2215_s2] ss:$0 sm:$0xff]  ;;  %vm453_vm2 = vcmask 64512   ;;  %vm1117_vm3 = vcmask 130048  }
  0x54   : > { %v1621_v7 = vpack.c.bf16 %v362_v6, %v361_v4  ;;  %s1865_s26 = smov 112   ;;  %s1866_s27 = smov 64   ;;  %vm1119_vm4 = vcmask 195584  }
  0x55   : > { %s1478_s17 = sshll.u32 %s355_s18, 3  ;;  %1619 = vmatpush3.bf16.msra.mxu0 %v1618_v5  ;;  %s1862_s18 = smov 104  }
  0x56   : > { %1620 = vmatprep.subr.bf16.mxu0 %v1859_v0  ;;  %s357_s23 = scalar_lea.vmem %s2213_s0, %s1478_s17  ;;  %s1867_s17 = smov 8  }
  0x57   : > { %v2065_v8 = vld [vmem:[%s357_s23] sm:$0xff]  ;;  %s1868_s22 = smov 24   ;;  %s1869_s25 = smov 16  }
  0x58   : > { %s351_s28 = sand.u32 1, %s1845_s10   ;;  %p2241_p1 = scmp.ne.s32.totalorder %s2232_s19, 0 }
  0x59   : > { %1622 = vmatpush3.bf16.msra.mxu0 %v1621_v7  ;;  %s1477_s29 = sshll.u32 %s351_s28, 3 }
  0x5a   : > { %1558 = vmatprep.subr.mxu0 %v1861_v1 }
  0x5c   : > { %1546 = vmatmul.mubr.msk.f32.vlgmr.msra.gmra.mrb[0].mxu0 %vm370_vm1, %v2065_v8 }
  0x5d   : > { %1560 = vmatprep.mubr.msk.f32.mxu0 %vm1860_vm0, %v1861_v1 }
 0x12f   : > { %v440_v10 = vpop.f32.mrb[0].mxu0 }
 0x130   : > { %v441_v11 = vadd.f32 %v1479_v9, %v440_v10  ;;  %v1547_v12 = vpop.f32.mrb[1].mxu0  ;;  %v1121_v9 = vld [vmem:[#allocation2] sm:$0xff]  ;;  %v1122_v10 = vld [vmem:[#allocation2 + $0x8] sm:$0xff] }
 0x131   : > { %v1123_v12 = vld [vmem:[#allocation2 + $0x10] sm:$0xff] }
 0x132   : > { %449 = vrot.lane.b32.xlu1 %v441_v11, %s1862_s18  ;;  %445 = vrot.lane.b32.xlu0 %v441_v11, %s1863_s21  ;;  %s1375_s18 = scalar_lea.sflag [#allocation4], %s351_s28 }
 0x136   : > { %451 = vrot.lane.b32.xlu1 %v441_v11, %s1864_s24  ;;  %447 = vrot.lane.b32.xlu0 %v441_v11, %s1865_s26 }
 0x1a4   : > { %v2075_v13 = vpop.permute.xlu1 %449  ;;  %v446_v14 = vpop.permute.xlu0 %445 }
 0x1a5   : > { %528 = vrot.lane.b32.xlu0 %v446_v14, %s1864_s24 }
 0x1a8   : > { %v452_v15 = vpop.permute.xlu1 %451  ;;  %v2077_v16 = vpop.permute.xlu0 %447 }
 0x1a9   : > { %1549 = vmatpush3.xpose.msk.msra.mxu1 %vm453_vm2, %v452_v15  ;;  %680 = vrot.lane.b32.xlu0 %v2075_v13, %s1864_s24  ;;  %v1206_v15 = vld [vmem:[%s2218_s5] sm:$0xff] }
 0x1aa   : > { %604 = vrot.lane.b32.xlu1 %v2077_v16, %s1864_s24  ;;  %1553 = vmatprep.subr.mxu1 %v1861_v1 }
 0x1ac   : > { %1551 = vmatmul.mubr.msk.f32.vlgmr.msra.gmra.mrb[0].mxu1 %vm453_vm2, %v441_v11 }
 0x1ad   : > { %1555 = vmatprep.mubr.msk.f32.mxu1 %vm1860_vm0, %v1861_v1 }
 0x217   : > { %v529_v17 = vpop.permute.xlu0 %528 }
 0x218   : > { %1554 = vmatpush3.xpose.msk.msra.mxu1 %vm453_vm2, %v529_v17 }
 0x219   : > { %1563 = vmatprep.subr.mxu1 %v1861_v1 }
 0x21b   : > { %1556 = vmatmul.mubr.msk.f32.vlgmr.msra.gmra.mrb[2].mxu1 %vm453_vm2, %v446_v14  ;;  %v681_v18 = vpop.permute.xlu0 %680 }
 0x21c   : > { %v605_v19 = vpop.permute.xlu1 %604  ;;  %1564 = vmatpush3.xpose.msk.msra.mxu1 %vm453_vm2, %v681_v18  ;;  %1565 = vmatprep.mubr.msk.f32.mxu1 %vm1860_vm0, %v1861_v1 }
 0x21d   : > { %1559 = vmatpush3.xpose.msk.msra.mxu0 %vm453_vm2, %v605_v19  ;;  %1573 = vmatprep.subr.mxu1 %v1861_v1 }
 0x21e   : > { %1568 = vmatprep.subr.mxu0 %v1861_v1 }
 0x21f   : > { %1566 = vmatmul.mubr.msk.f32.vlgmr.msra.gmra.mrb[4].mxu1 %vm453_vm2, %v2075_v13 }
 0x220   : > { %1561 = vmatmul.mubr.msk.f32.vlgmr.msra.gmra.mrb[2].mxu0 %vm453_vm2, %v2077_v16  ;;  %1575 = vmatprep.mubr.msk.f32.mxu1 %vm1860_vm0, %v1861_v1 }
 0x221   : > { %1570 = vmatprep.mubr.msk.f32.mxu0 %vm1860_vm0, %v1861_v1 }
 0x27f   : > { %v524_v20 = vpop.f32.mrb[0].mxu1 }
 0x280   : > { %v1552_v21 = vpop.f32.mrb[1].mxu1  ;;  %v756_v22 = vsel %vm453_vm2, %v524_v20, -inf }
 0x281   : > { %757 = vmax.xlane.f32.xlu1 %v756_v22 }
 0x2ee   : > { %v600_v23 = vpop.f32.mrb[2].mxu1 }
 0x2ef   : > { %v1557_v24 = vpop.f32.mrb[3].mxu1  ;;  %v759_v25 = vsel %vm453_vm2, %v600_v23, -inf }
 0x2f0   : > { %760 = vmax.xlane.f32.xlu0 %v759_v25 }
 0x2f2   : > { %v752_v26 = vpop.f32.mrb[4].mxu1 }
 0x2f3   : > { %v676_v27 = vpop.f32.mrb[2].mxu0  ;;  %v1567_v28 = vpop.f32.mrb[5].mxu1  ;;  %v765_v29 = vsel %vm453_vm2, %v752_v26, -inf }
 0x2f4   : > { %v1562_v30 = vpop.f32.mrb[3].mxu0  ;;  %766 = vmax.xlane.f32.xlu1 %v765_v29  ;;  %v762_v31 = vsel %vm453_vm2, %v676_v27, -inf  ;;  %v1208_v29 = vld [vmem:[%s2218_s5 + $0x10] sm:$0xff] }
 0x2f5   : > { %763 = vmax.xlane.f32.xlu0 %v762_v31  ;;  %v1209_v30 = vld [vmem:[%s2218_s5 + $0x18] sm:$0xff] }
 0x2f6   : > { %v1633_v31 = vpack.c.bf16 %v1209_v30, %v1208_v29 }
 0x305   : > { %876 = vrot.lane.b32.xlu1 %v446_v14, %s1866_s27 }
 0x30b   : > { %800 = vrot.lane.b32.xlu0 %v441_v11, %s1866_s27  ;;  %v1624_v11 = vpack.c.bf16 %v1122_v10, %v1121_v9 }
 0x30e   : > { %v758_v32 = vpop.xlane.xlu1 %757 }
 0x30f   : > { %v768_v33 = vsub.f32 %v524_v20, %v758_v32  ;;  %v1493_v32 = vld [vmem:[%s2217_s4] ss:$0 sm:$0xff] }
 0x311   : > { %v772_v34 = vmul.f32 1.442695, %v768_v33 }
 0x313   : > { %1711 = vpow2.f32 %v772_v34 }
 0x31d   : > { %v1712_v35 = vpop.eup %1711 }
 0x31e   : > { %v780_v36 = vsel %vm453_vm2, %v1712_v35, 0.0 }
 0x32a   : > { %781 = vadd.xlane.f32.xlu0 %v780_v36  ;;  %v1290_v36 = vld [vmem:[#allocation5] sm:$0xff] }
 0x37d   : > { %v761_v37 = vpop.xlane.xlu0 %760 }
 0x37e   : > { %v769_v38 = vsub.f32 %v600_v23, %v761_v37  ;;  %v1291_v37 = vld [vmem:[#allocation5 + $0x8] sm:$0xff] }
 0x380   : > { %v774_v39 = vmul.f32 1.442695, %v769_v38  ;;  %v1636_v38 = vpack.c.bf16 %v1291_v37, %v1290_v36 }
 0x381   : > { %v767_v40 = vpop.xlane.xlu1 %766 }
 0x382   : > { %1713 = vpow2.f32 %v774_v39  ;;  %v771_v41 = vsub.f32 %v752_v26, %v767_v40  ;;  %v764_v42 = vpop.xlane.xlu0 %763  ;;  %v1495_v39 = vld [vmem:[%s2219_s6] ss:$0 sm:$0xff] }
 0x383   : > { %v770_v43 = vsub.f32 %v676_v27, %v764_v42 }
 0x384   : > { %v778_v44 = vmul.f32 1.442695, %v771_v41 }
 0x385   : > { %v776_v45 = vmul.f32 1.442695, %v770_v43  ;;  %v877_v46 = vpop.permute.xlu1 %876 }
 0x386   : > { %1715 = vpow2.f32 %v778_v44  ;;  %v801_v47 = vpop.permute.xlu0 %800  ;;  %1574 = vmatpush3.msra.mxu1 %v877_v46 }
 0x387   : > { %1717 = vpow2.f32 %v776_v45  ;;  %1569 = vmatpush3.msra.mxu0 %v801_v47  ;;  %1583 = vmatprep.subr.mxu1 %v1861_v1 }
 0x388   : > { %1578 = vmatprep.subr.mxu0 %v1861_v1 }
 0x38c   : > { %v1714_v48 = vpop.eup %1713 }
 0x38d   : > { %v783_v49 = vsel %vm453_vm2, %v1714_v48, 0.0 }
 0x38e   : > { %784 = vadd.xlane.f32.xlu1 %v783_v49 }
 0x390   : > { %v1716_v50 = vpop.eup %1715 }
 0x391   : > { %v1718_v51 = vpop.eup %1717  ;;  %v789_v52 = vsel %vm453_vm2, %v1716_v50, 0.0 }
 0x392   : > { %790 = vadd.xlane.f32.xlu1 %v789_v52  ;;  %v786_v53 = vsel %vm453_vm2, %v1718_v51, 0.0 }
 0x393   : > { %787 = vadd.xlane.f32.xlu0 %v786_v53 }
 0x3a3   : > { %952 = vrot.lane.b32.xlu1 %v2077_v16, %s1866_s27  ;;  %v1207_v16 = vld [vmem:[%s2218_s5 + $0x8] sm:$0xff] }
 0x3a4   : > { %v1630_v17 = vpack.c.bf16 %v1207_v16, %v1206_v15 }
 0x3a9   : > { %1028 = vrot.lane.b32.xlu0 %v2075_v13, %s1866_s27  ;;  %v1124_v13 = vld [vmem:[#allocation2 + $0x18] sm:$0xff] }
 0x3aa   : > { %v1627_v14 = vpack.c.bf16 %v1124_v13, %v1123_v12 }
 0x3b7   : > { %v782_v54 = vpop.xlane.xlu0 %781 }
 0x3b8   : > { %1719 = vrcp.f32 %v782_v54 }
 0x3c2   : > { %v1720_v55 = vpop.eup %1719 }
 0x3c3   : > { %v796_v56 = vmul.f32 %v1720_v55, %v1712_v35 }
 0x3c5   : > { %1571 = vmatmul.mubr.msk.f32.vlgmr.msra.gmra.mrb[4].mxu0 %vm453_vm2, %v796_v56 }
 0x3c6   : > { %1580 = vmatprep.mubr.msk.f32.mxu0 %vm1860_vm0, %v1861_v1 }
 0x41b   : > { %v785_v57 = vpop.xlane.xlu1 %784 }
 0x41c   : > { %1721 = vrcp.f32 %v785_v57 }
 0x41f   : > { %v791_v58 = vpop.xlane.xlu1 %790 }
 0x420   : > { %1723 = vrcp.f32 %v791_v58  ;;  %v788_v59 = vpop.xlane.xlu0 %787 }
 0x421   : > { %1725 = vrcp.f32 %v788_v59 }
 0x423   : > { %v953_v60 = vpop.permute.xlu1 %952 }
 0x424   : > { %1579 = vmatpush3.msra.mxu0 %v953_v60  ;;  %v1029_v63 = vpop.permute.xlu0 %1028 }
 0x425   : > { %1623 = vmatprep.subr.bf16.mxu0 %v1859_v0 }
 0x426   : > { %v1722_v61 = vpop.eup %1721 }
 0x427   : > { %v797_v62 = vmul.f32 %v1722_v61, %v1714_v48 }
 0x429   : > { %1576 = vmatmul.mubr.msk.f32.vlgmr.msra.gmra.mrb[6].mxu1 %vm453_vm2, %v797_v62 }
 0x42a   : > { %v1724_v2 = vpop.eup %1723  ;;  %1584 = vmatpush3.msra.mxu1 %v1029_v63  ;;  %1585 = vmatprep.mubr.msk.f32.mxu1 %vm1860_vm0, %v1861_v1 }
 0x42b   : > { %v1726_v3 = vpop.eup %1725  ;;  %v799_v4 = vmul.f32 %v1724_v2, %v1716_v50  ;;  %1629 = vmatprep.subr.bf16.mxu1 %v1859_v0 }
 0x42c   : > { %v798_v5 = vmul.f32 %v1726_v3, %v1718_v51 }
 0x42d   : > { %1586 = vmatmul.mubr.msk.f32.vlgmr.msra.gmra.mrb[8].mxu1 %vm453_vm2, %v799_v4 }
 0x42e   : > { %1581 = vmatmul.mubr.msk.f32.vlgmr.msra.gmra.mrb[6].mxu0 %vm453_vm2, %v798_v5  ;;  %1607 = vmatprep.mubr.msk.f32.mxu1 %vm1860_vm0, %v1861_v1 }
 0x42f   : > { %1596 = vmatprep.mubr.msk.f32.mxu0 %vm1860_vm0, %v1861_v1  ;;  %1625 = vmatpush3.bf16.msra.mxu0 %v1624_v11 }
 0x430   : > { %1626 = vmatprep.subr.bf16.mxu0 %v1859_v0  ;;  %1631 = vmatpush3.bf16.msra.mxu1 %v1630_v17 }
 0x431   : > { %1632 = vmatprep.subr.bf16.mxu1 %v1859_v0 }
 0x433   : > { %1628 = vmatpush3.bf16.msra.mxu0 %v1627_v14 }
 0x434   : > { %1635 = vmatprep.subr.bf16.mxu0 %v1859_v0  ;;  %1634 = vmatpush3.bf16.msra.mxu1 %v1633_v31 }
 0x498   : > { %v872_v6 = vpop.f32.mrb[4].mxu0 }
 0x499   : > { %v1572_v7 = vpop.f32.mrb[5].mxu0 }
 0x4fc   : > { %v948_v18 = vpop.f32.mrb[6].mxu1 }
 0x4fd   : > { %1105 = vrot.lane.b32.xlu1 %v948_v18, %s1867_s17  ;;  %v1577_v19 = vpop.f32.mrb[7].mxu1  ;;  %s1500_s17 = sshll.u32 %s1942_s13, 7  ;;  %s1870_s13 = smov [#allocation7]  }
 0x4fe   : > { %s2170_s15 = scalar_lea.hbm %s2222_s9, %s1500_s17  ;;  %s1787_s24 = sshll.u32 %s1870_s13, 4  ;;  %s1788_s24 = int_to_ptr.vmem [resolvable:$false] %s1787_s24 }
 0x4ff   : > { %s1789_s26 = scalar_lea.vmem %s1788_s24, 256 }
 0x500   : > { %v1100_v20 = vpop.f32.mrb[8].mxu1 }
 0x501   : > { %v1024_v21 = vpop.f32.mrb[6].mxu0  ;;  %1113 = vrot.lane.b32.xlu1 %v1100_v20, %s1868_s22  ;;  %v1587_v22 = vpop.f32.mrb[9].mxu1  ;;  %s353_s22 = scalar_lea.vmem [#allocation7], %s1477_s29 }
 0x502   : > { %1109 = vrot.lane.b32.xlu0 %v1024_v21, %s1869_s25  ;;  %v1582_v23 = vpop.f32.mrb[7].mxu0  ;;  %s1388_s25 = sshll.u32 %s353_s22, 4  ;;  %s2172_s25 = int_to_ptr.vmem [resolvable:$true] %s1388_s25 }
 0x503   : > { %s1783_s21 = scalar_lea.vmem %s2172_s25, 128  ;;  %p1790_p4 = scmp.lt.s32.totalorder %s2172_s25, %s1788_s24 }
 0x504   : > { %p1784_p12 = scmp.ne.s32.totalorder %s2172_s25, %s1783_s21  ;;  %p1791_p7 = scmp.lt.s32.totalorder %s1789_s26, %s1783_s21 }
 0x506   : > { %p1785_p2 = pnand %p1784_p12, %p2241_p1  ;;  %p1792_p8 = por %p1791_p7, %p1790_p4 }
 0x508   : > { %p1786_p3 = pneg %p1785_p2 }
 0x50a   : > { %p1793_p11 = pnand %p1792_p8, %p1786_p3 }
 0x56f   : > { %v1106_v24 = vpop.permute.xlu1 %1105 }
 0x570   : > { %v1116_v26 = vsel %vm453_vm2, %v872_v6, %v1106_v24 }
 0x573   : > { %v1114_v25 = vpop.permute.xlu1 %1113 }
 0x574   : > { %v1110_v27 = vpop.permute.xlu0 %1109 }
 0x575   : > { %v1118_v0 = vsel %vm1117_vm3, %v1116_v26, %v1110_v27 }
 0x576   : > { %v1120_v28 = vsel %vm1119_vm4, %v1118_v0, %v1114_v25 }
 0x577   : > { %1597 = vmatmul.mubr.msk.f32.vlgmr.msra.gmra.mrb[8].mxu0 %vm370_vm1, %v1120_v28 }
 0x578   : > { %1614 = vmatprep.mubr.msk.f32.mxu0 %vm1860_vm0, %v1861_v1  ;;  %1637 = vmatpush3.bf16.msra.mxu0 %v1636_v38 }
 0x64a   : > { %v1201_v33 = vpop.f32.mrb[8].mxu0 }
 0x64b   : > { %v1202_v34 = vadd.f32 %v1493_v32, %v1201_v33  ;;  %v1598_v35 = vpop.f32.mrb[9].mxu0 }
 0x64d   : > { %v1205_v1 = vadd.f32 %v1202_v34, %v2065_v8  ;;  %v1497_v8 = vld [vmem:[%s2221_s8] ss:$0 sm:$0xff] }
 0x64f   : > { %1608 = vmatmul.mubr.msk.f32.vlgmr.msra.gmra.mrb[10].mxu1 %vm370_vm1, %v1205_v1 }
 0x722   : > { %v1286_v40 = vpop.f32.mrb[10].mxu1 }
 0x723   : > { %v1287_v41 = vadd.f32 %v1495_v39, %v1286_v40  ;;  %v1609_v42 = vpop.f32.mrb[11].mxu1 }
 0x725   : > { %1615 = vmatmul.mubr.msk.f32.vlgmr.msra.gmra.mrb[10].mxu0 %vm1117_vm3, %v1287_v41 }
 0x7f8   : > { %v1368_v43 = vpop.f32.mrb[10].mxu0 }
 0x7f9   : > { %v1369_v44 = vadd.f32 %v1497_v8, %v1368_v43  ;;  %v1616_v45 = vpop.f32.mrb[11].mxu0 }
 0x7fb   : > { %v1372_v46 = vadd.f32 %v1369_v44, %v1205_v1 }
 0x7fd   : > { %1373 = vst.msk [vmem:[%s353_s22] sm:$0xff] %vm370_vm1, %v1372_v46 }
 0x7fe   : > { %1796 = shalt.err (!%p1793_p11)
}
 0x7ff   : > { %s1797_s27 = scalar_lea.hbm %s2170_s15, 128  ;;  %s1801_s14 = scalar_lea.hbm %s2222_s9, 256 }
 0x800   : > { %p1798_p13 = scmp.ne.s32.totalorder %s2170_s15, %s1797_s27  ;;  %p1802_p6 = scmp.lt.u32.totalorder %s2170_s15, %s2222_s9 }
 0x801   : > { %p1803_p9 = scmp.lt.u32.totalorder %s1801_s14, %s1797_s27  ;;  %p1805_p12 = scmp.lt.u32.totalorder %s1797_s27, %s2170_s15 }
 0x802   : > { %p1799_p5 = pnand %p1798_p13, %p2241_p1 }
 0x803   : > { %p1804_p10 = por %p1803_p9, %p1802_p6 }
 0x804   : > { %p1800_p0 = pneg %p1799_p5 }
 0x805   : > { %p1806_p2 = por %p1805_p12, %p1804_p10 }
 0x807   : > { %p1807_p3 = pnand %p1806_p2, %p1800_p0 }
 0x809   : > { %1810 = shalt.err (!%p1807_p3)
}
 0x80a   : > { %1646 = dma.vmem_to_hbm [thread:$0]  (%p2241_p1), %s2172_s25, 128, %s2170_s15, %s1375_s18  }
 0x80b PF: > { %p1663_p4 = scmp.ge.s32.totalorder %s1853_s12, 2  ;;  %s1400_s22 = sand.u32 1, %s1841_s30  }
 0x80c   : > { %p2242_p7 = scmp.ne.s32.totalorder %s2233_s20, 0  ;;  %s1401_s23 = scalar_lea.sflag [#allocation4], %s1400_s22 }
 0x80e   : > { %p1656_p8 = pnand %p1663_p4, %p2242_p7 }
 0x810   : > { %1836 = dma.done.wait (!%p1656_p8), %s1401_s23, 128  }
 0x811   : > { %1838 = vsyncadd (!%p1656_p8), %s1401_s23, 4294967168  ;;  %s2243_s12 = sld [smem:[#allocation12_spill]]  ;;  %s2244_s11 = sld [smem:[#allocation11_spill]] }
 0x812   : > { %s2245_s21 = sld [smem:[#allocation13_spill]]  ;;  %s2246_s30 = smov %s1845_s10 }
 0x817   : > { %p21_p11 = scmp.ge.s32.totalorder %s2243_s12, 4   ;;  %s2247_s10 = smov %s2244_s11 }
 0x818   : > { %s2248_s11 = smov %s2245_s21 }
 0x819   :  { %23 = sbr.rel (!%p21_p11) target bundleno = 5 (0x5), region = 100 }
 0x820   :  { %1406 = vsyncpa [#allocation3], 1 }
 0x821   :  { %1408 = vsyncpa [#allocation3 + $0x1], 1 }
 0x822   :  { %1409 = vsyncpa [#allocation6], 1 }
 0x823   :  { %1410 = vsyncpa [#allocation4], 1 }
 0x824   :  { %1412 = vsyncpa [#allocation4 + $0x1], 1 }

</bundles_post_ra>
